<compile_context>
chip_gen: v7x
topology: tpu7x:2x2x1
jax: 0.10.0
libtpu: 0.0.40
codegen_flags: <defaults>
</compile_context>

<pallas_src>
import jax
import jax.numpy as jnp
from jax.experimental import pallas as pl
from jax.experimental.pallas import tpu as pltpu

VOCAB = 26
HID = 128           # n_hidden_dimensions
NCLASS = 5
NPAD = 128          # lane-dense padded fc output width
TT = 8              # time steps per grid block (gxf streamed in blocks of TT)


def bilstm_kernel(lens_ref,            # (TB,1) int32   per-sequence lengths
                  full_ref,            # (TB,1) f32     1.0 where len == max_len
                  gxf_ref,             # (TT,TB,4H) bf16  forward x@W_ih + b (streamed)
                  gxb_ref,             # (TB,4H)  bf16    backward x[max_len-1]@W_ih + b
                  whh_f_ref,           # (H,4H) bf16
                  whh_b_ref,           # (H,4H) bf16
                  h0f_ref, c0f_ref,    # (TB,H) f32 initial states
                  h0b_ref, c0b_ref,
                  fcw_f_ref, fcw_b_ref, fcb_ref,   # (H,NPAD), (H,NPAD), (1,NPAD) f32
                  out_ref,             # (TB,NPAD) f32
                  h_sc, c_sc):         # VMEM scratch (TB,H) f32, carried across time blocks
    t_blk = pl.program_id(1)
    n_tblk = pl.num_programs(1)
    tt = gxf_ref.shape[0]

    @pl.when(t_blk == 0)
    def _():
        h_sc[...] = h0f_ref[...]
        c_sc[...] = c0f_ref[...]

    def cell(gx_bf16, h, c, whh_bf16):
        # gates = (x @ W_ih + b, precomputed, bf16) + h @ W_hh ; gate order [i, f, o | g]
        gates = gx_bf16.astype(jnp.float32) + jnp.dot(
            h.astype(jnp.bfloat16), whh_bf16, preferred_element_type=jnp.float32)
        ifo = jax.nn.sigmoid(gates[:, :3 * HID])   # one contiguous sigmoid slab (TB, 3H)
        g = jnp.tanh(gates[:, 3 * HID:])           # one contiguous tanh slab    (TB, H)
        c_new = ifo[:, HID:2 * HID] * c + ifo[:, :HID] * g
        h_new = ifo[:, 2 * HID:] * jnp.tanh(c_new)
        return h_new, c_new

    # ---- forward recurrence over this time block (TT is small & static; the grid
    # boundary bounds live ranges, so a Python unroll here is fine).
    lens = lens_ref[...]
    whh_f = whh_f_ref[...]
    h = h_sc[...]
    c = c_sc[...]
    for lt in range(tt):
        t = t_blk * tt + lt
        h_new, c_new = cell(gxf_ref[lt], h, c, whh_f)
        inside = t < lens                          # (TB,1) bool: still inside sequence
        h = jnp.where(inside, h_new, h)
        c = jnp.where(inside, c_new, c)
    h_sc[...] = h
    c_sc[...] = c

    # ---- finalize on the last time block: backward one-step, fc, softmax.
    @pl.when(t_blk == n_tblk - 1)
    def _():
        full = full_ref[...]
        fwd = full * h_sc[...]                     # only full-length sequences contribute
        h_b, _ = cell(gxb_ref[...], h0b_ref[...], c0b_ref[...], whh_b_ref[...])
        bwd = full * h_b
        logits = (jnp.dot(fwd, fcw_f_ref[...], preferred_element_type=jnp.float32)
                  + jnp.dot(bwd, fcw_b_ref[...], preferred_element_type=jnp.float32)
                  + fcb_ref[...])                  # padded cols carry -1e30 bias
        logits = logits - jnp.max(logits, axis=1, keepdims=True)
        e = jnp.exp(logits)
        inv = pl.reciprocal(jnp.sum(e, axis=1, keepdims=True), approx=True)
        out_ref[...] = e * inv


@jax.jit
def bilstm_forward(params, x_btv, seq_lens):
    """x_btv: (B, T, VOCAB) float32 (batch-first, like the PyTorch module).
    seq_lens: (B,) int32."""
    B, T, V = x_btv.shape
    assert V == VOCAB

    # Pad batch to a sublane multiple, then to a multiple of the batch tile TB.
    Bp = ((B + 7) // 8) * 8
    TB = Bp if Bp <= 128 else 128
    Bp = ((Bp + TB - 1) // TB) * TB
    Tp = ((T + TT - 1) // TT) * TT

    x = x_btv.astype(jnp.float32)
    lens = seq_lens.astype(jnp.int32)
    max_len = jnp.max(lens)

    # Input projections + bias fold hoisted into XLA (one big matmul), shipped bf16.
    gxf = jnp.einsum("btv,vg->tbg", x, params["wih_f"]) + params["b_f"]     # (T,B,4H)
    gxf = gxf.astype(jnp.bfloat16)
    idx = jnp.maximum(max_len - 1, 0)                                       # guard len==0
    x_last = jax.lax.dynamic_index_in_dim(x, idx, axis=1, keepdims=False)   # (B, V)
    gxb = (jnp.dot(x_last, params["wih_b"]) + params["b_b"]).astype(jnp.bfloat16)

    full = (lens == max_len).astype(jnp.float32).reshape(B, 1)

    def pad_to(a, axis, size):
        if a.shape[axis] == size:
            return a
        cfg = [(0, 0)] * a.ndim
        cfg[axis] = (0, size - a.shape[axis])
        return jnp.pad(a, cfg)

    # Lane-dense fc: pad N=5 -> 128. Padded logits get a huge negative bias so they
    # vanish in the softmax; output stores become full-width unmasked vst.
    fcw_f = jnp.zeros((HID, NPAD), jnp.float32).at[:, :NCLASS].set(params["fcw_f"])
    fcw_b = jnp.zeros((HID, NPAD), jnp.float32).at[:, :NCLASS].set(params["fcw_b"])
    fcb = jnp.full((1, NPAD), -1e30, jnp.float32).at[:, :NCLASS].set(params["fcb"])

    args = (
        pad_to(lens.reshape(B, 1), 0, Bp),
        pad_to(full, 0, Bp),
        pad_to(pad_to(gxf, 0, Tp), 1, Bp),
        pad_to(gxb, 0, Bp),
        params["whh_f"], params["whh_b"],
        pad_to(params["h0f"], 0, Bp), pad_to(params["c0f"], 0, Bp),
        pad_to(params["h0b"], 0, Bp), pad_to(params["c0b"], 0, Bp),
        fcw_f, fcw_b, fcb,
    )

    grid = (Bp // TB, Tp // TT)   # (batch blocks: parallel, time blocks: arbitrary)

    in_specs = [
        pl.BlockSpec((TB, 1), lambda b, t: (b, 0)),               # lens
        pl.BlockSpec((TB, 1), lambda b, t: (b, 0)),               # full
        pl.BlockSpec((TT, TB, 4 * HID), lambda b, t: (t, b, 0)),  # gxf (streamed in time)
        pl.BlockSpec((TB, 4 * HID), lambda b, t: (b, 0)),         # gxb
        pl.BlockSpec((HID, 4 * HID), lambda b, t: (0, 0)),        # whh_f
        pl.BlockSpec((HID, 4 * HID), lambda b, t: (0, 0)),        # whh_b
        pl.BlockSpec((TB, HID), lambda b, t: (b, 0)),             # h0f
        pl.BlockSpec((TB, HID), lambda b, t: (b, 0)),             # c0f
        pl.BlockSpec((TB, HID), lambda b, t: (b, 0)),             # h0b
        pl.BlockSpec((TB, HID), lambda b, t: (b, 0)),             # c0b
        pl.BlockSpec((HID, NPAD), lambda b, t: (0, 0)),           # fcw_f
        pl.BlockSpec((HID, NPAD), lambda b, t: (0, 0)),           # fcw_b
        pl.BlockSpec((1, NPAD), lambda b, t: (0, 0)),             # fcb
    ]
    out_specs = pl.BlockSpec((TB, NPAD), lambda b, t: (b, 0))

    # VMEM budget sized from the actual buffers (gxf is the only time-varying tile,
    # double-buffered by the pipeline) + generous headroom.
    vmem_bytes = (
        2 * TT * TB * 4 * HID * 2        # gxf, double-buffered, bf16
        + TB * 4 * HID * 2               # gxb
        + 2 * HID * 4 * HID * 2          # whh f/b
        + 6 * TB * HID * 4               # h0/c0 (x4) + h/c scratch (x2)
        + 2 * HID * NPAD * 4 + NPAD * 4  # fc weights + bias
        + 2 * TB * NPAD * 4              # output
        + 2 * TB * 8                     # lens + full
    )
    vmem_limit = int(min(max(2 * vmem_bytes + (4 << 20), 8 << 20), 100 << 20))

    cost = pl.CostEstimate(
        flops=2 * (Tp + 1) * Bp * HID * 4 * HID + 4 * Bp * HID * NPAD,
        transcendentals=(Tp + 1) * Bp * 5 * HID + Bp * NPAD,
        bytes_accessed=sum(int(a.size) * a.dtype.itemsize for a in args) + Bp * NPAD * 4,
    )

    out = pl.pallas_call(
        bilstm_kernel,
        out_shape=jax.ShapeDtypeStruct((Bp, NPAD), jnp.float32),
        grid_spec=pltpu.PrefetchScalarGridSpec(
            num_scalar_prefetch=0,
            grid=grid,
            in_specs=in_specs,
            out_specs=out_specs,
            scratch_shapes=[pltpu.VMEM((TB, HID), jnp.float32),   # h carry
                            pltpu.VMEM((TB, HID), jnp.float32)],  # c carry
        ),
        compiler_params=pltpu.CompilerParams(
            dimension_semantics=("parallel", "arbitrary"),
            vmem_limit_bytes=vmem_limit,
        ),
        cost_estimate=cost,
    )(*args)
    return out[:B, :NCLASS]


def _reorder_gates(w, axis):
    """PyTorch gate order [i, f, g, o] -> kernel order [i, f, o, g] along `axis`."""
    i, f, g, o = jnp.split(w, 4, axis=axis)
    return jnp.concatenate([i, f, o, g], axis=axis)


def init_params(key, batch_size):
    ks = jax.random.split(key, 16)
    bound = 1.0 / jnp.sqrt(jnp.float32(HID))

    def u(k, shape):
        return jax.random.uniform(k, shape, jnp.float32, -bound, bound)

    # Weights generated in PyTorch gate order (i,f,g,o), then permuted to kernel order.
    wih_f = _reorder_gates(u(ks[0], (VOCAB, 4 * HID)), axis=1)
    whh_f = _reorder_gates(u(ks[1], (HID, 4 * HID)), axis=1)
    b_f = _reorder_gates(u(ks[2], (1, 4 * HID)) + u(ks[3], (1, 4 * HID)), axis=1)
    wih_b = _reorder_gates(u(ks[4], (VOCAB, 4 * HID)), axis=1)
    whh_b = _reorder_gates(u(ks[5], (HID, 4 * HID)), axis=1)
    b_b = _reorder_gates(u(ks[6], (1, 4 * HID)) + u(ks[7], (1, 4 * HID)), axis=1)
    fcw = u(ks[12], (2 * HID, NCLASS))

    return {
        # input-projection weights + biases: f32, consumed by XLA in the wrapper
        "wih_f": wih_f,
        "wih_b": wih_b,
        "b_f": b_f,
        "b_b": b_b,
        # recurrent weights: bf16 for full-rate MXU + halved VMEM/DMA; f32 accumulation
        "whh_f": whh_f.astype(jnp.bfloat16),
        "whh_b": whh_b.astype(jnp.bfloat16),
        # initial hidden / cell states (h0,c0 ~ randn(2, B, H), split per direction)
        "h0f": jax.random.normal(ks[8], (batch_size, HID), jnp.float32),
        "h0b": jax.random.normal(ks[9], (batch_size, HID), jnp.float32),
        "c0f": jax.random.normal(ks[10], (batch_size, HID), jnp.float32),
        "c0b": jax.random.normal(ks[11], (batch_size, HID), jnp.float32),
        # fc: Linear(2H -> 5), stored transposed and pre-split into fwd/bwd halves
        "fcw_f": fcw[:HID],
        "fcw_b": fcw[HID:],
        "fcb": u(ks[13], (1, NCLASS)),
    }


if __name__ == "__main__":
    key = jax.random.PRNGKey(0)
    k_param, k_x = jax.random.split(key)

    B, T = 2, 8
    params = init_params(k_param, B)

    # deterministic example input: (B, T, VOCAB) float32
    x = jax.random.normal(k_x, (B, T, VOCAB), jnp.float32)
    seq_lens = jnp.array([8, 5], dtype=jnp.int32)   # lens <= T, max len == T

    out = bilstm_forward(params, x, seq_lens)
    out = jax.block_until_ready(out)

    assert out.shape == (B, NCLASS)
    assert bool(jnp.all(jnp.isfinite(out)))
    # rows are softmax distributions (approx reciprocal -> slightly looser tolerance)
    assert bool(jnp.allclose(jnp.sum(out, axis=1), 1.0, atol=5e-3))

    print("KERNEL_OK")
</pallas_src>

<mosaic_0001>
module attributes {stable_mosaic.version = 11 : i64} {
  func.func @bilstm_kernel(%arg0: i32, %arg1: i32, %arg2: memref<8x1xi32, #tpu.memory_space<vmem>>, %arg3: memref<8x1xf32, #tpu.memory_space<vmem>>, %arg4: memref<8x8x512xbf16, #tpu.memory_space<vmem>>, %arg5: memref<8x512xbf16, #tpu.memory_space<vmem>>, %arg6: memref<128x512xbf16, #tpu.memory_space<vmem>>, %arg7: memref<128x512xbf16, #tpu.memory_space<vmem>>, %arg8: memref<8x128xf32, #tpu.memory_space<vmem>>, %arg9: memref<8x128xf32, #tpu.memory_space<vmem>>, %arg10: memref<8x128xf32, #tpu.memory_space<vmem>>, %arg11: memref<8x128xf32, #tpu.memory_space<vmem>>, %arg12: memref<128x128xf32, #tpu.memory_space<vmem>>, %arg13: memref<128x128xf32, #tpu.memory_space<vmem>>, %arg14: memref<1x128xf32, #tpu.memory_space<vmem>>, %arg15: memref<8x128xf32, #tpu.memory_space<vmem>>, %arg16: memref<8x128xf32, #tpu.memory_space<vmem>>, %arg17: memref<8x128xf32, #tpu.memory_space<vmem>>) attributes {dimension_semantics = [#tpu.dimension_semantics<parallel>, #tpu.dimension_semantics<arbitrary>], iteration_bounds = array<i64: 1, 1>, scalar_prefetch = 0 : i64, scratch_operands = 2 : i64, tpu.core_type = #tpu.core_type<tc>, window_params = [{transform_indices = @transform_0, window_bounds = array<i64: 8, 1>}, {transform_indices = @transform_1, window_bounds = array<i64: 8, 1>}, {transform_indices = @transform_2, window_bounds = array<i64: 8, 8, 512>}, {transform_indices = @transform_3, window_bounds = array<i64: 8, 512>}, {pipeline_mode = #tpu.pipeline_mode<synchronous>, transform_indices = @transform_4, window_bounds = array<i64: 128, 512>}, {pipeline_mode = #tpu.pipeline_mode<synchronous>, transform_indices = @transform_5, window_bounds = array<i64: 128, 512>}, {transform_indices = @transform_6, window_bounds = array<i64: 8, 128>}, {transform_indices = @transform_7, window_bounds = array<i64: 8, 128>}, {transform_indices = @transform_8, window_bounds = array<i64: 8, 128>}, {transform_indices = @transform_9, window_bounds = array<i64: 8, 128>}, {pipeline_mode = #tpu.pipeline_mode<synchronous>, transform_indices = @transform_10, window_bounds = array<i64: 128, 128>}, {pipeline_mode = #tpu.pipeline_mode<synchronous>, transform_indices = @transform_11, window_bounds = array<i64: 128, 128>}, {pipeline_mode = #tpu.pipeline_mode<synchronous>, transform_indices = @transform_12, window_bounds = array<i64: 1, 128>}, {transform_indices = @transform_13, window_bounds = array<i64: 8, 128>}]} {
    %c0_i32 = arith.constant 0 : i32
    %0 = arith.cmpi eq, %arg1, %c0_i32 : i32
    %1 = arith.extui %0 : i1 to i32
    %c0_i32_0 = arith.constant 0 : i32
    %2 = arith.cmpi ne, %1, %c0_i32_0 : i32
    scf.if %2 {
      %c0_54 = arith.constant 0 : index
      %c0_55 = arith.constant 0 : index
      %268 = vector.load %arg8[%c0_54, %c0_55] : memref<8x128xf32, #tpu.memory_space<vmem>>, vector<8x128xf32>
      %c0_56 = arith.constant 0 : index
      %c0_57 = arith.constant 0 : index
      %269 = vector.load %arg16[%c0_56, %c0_57] : memref<8x128xf32, #tpu.memory_space<vmem>>, vector<8x128xf32>
      tpu.vector_store %arg16[%c0_56, %c0_57], %268 {strides = array<i32>} : memref<8x128xf32, #tpu.memory_space<vmem>>, vector<8x128xf32>,
      %c0_58 = arith.constant 0 : index
      %c0_59 = arith.constant 0 : index
      %270 = vector.load %arg9[%c0_58, %c0_59] : memref<8x128xf32, #tpu.memory_space<vmem>>, vector<8x128xf32>
      %c0_60 = arith.constant 0 : index
      %c0_61 = arith.constant 0 : index
      %271 = vector.load %arg17[%c0_60, %c0_61] : memref<8x128xf32, #tpu.memory_space<vmem>>, vector<8x128xf32>
      tpu.vector_store %arg17[%c0_60, %c0_61], %270 {strides = array<i32>} : memref<8x128xf32, #tpu.memory_space<vmem>>, vector<8x128xf32>,
    } else {
    }
    %c0 = arith.constant 0 : index
    %c0_1 = arith.constant 0 : index
    %3 = vector.load %arg2[%c0, %c0_1] : memref<8x1xi32, #tpu.memory_space<vmem>>, vector<8x1xi32>
    %c0_2 = arith.constant 0 : index
    %c0_3 = arith.constant 0 : index
    %4 = vector.load %arg6[%c0_2, %c0_3] : memref<128x512xbf16, #tpu.memory_space<vmem>>, vector<128x512xbf16>
    %c0_4 = arith.constant 0 : index
    %c0_5 = arith.constant 0 : index
    %5 = vector.load %arg16[%c0_4, %c0_5] : memref<8x128xf32, #tpu.memory_space<vmem>>, vector<8x128xf32>
    %c0_6 = arith.constant 0 : index
    %c0_7 = arith.constant 0 : index
    %6 = vector.load %arg17[%c0_6, %c0_7] : memref<8x128xf32, #tpu.memory_space<vmem>>, vector<8x128xf32>
    %c8_i32 = arith.constant 8 : i32
    %7 = arith.muli %arg1, %c8_i32 : i32
    %c0_i32_8 = arith.constant 0 : i32
    %8 = arith.addi %7, %c0_i32_8 : i32
    %c0_9 = arith.constant 0 : index
    %c0_10 = arith.constant 0 : index
    %c0_11 = arith.constant 0 : index
    %9 = vector.load %arg4[%c0_9, %c0_10, %c0_11] : memref<8x8x512xbf16, #tpu.memory_space<vmem>>, vector<1x8x512xbf16>
    %10 = vector.shape_cast %9 : vector<1x8x512xbf16> to vector<8x512xbf16>
    %11 = arith.extf %10 : vector<8x512xbf16> to vector<8x512xf32>
    %12 = arith.truncf %5 : vector<8x128xf32> to vector<8x128xbf16>
    %cst = arith.constant dense<0.000000e+00> : vector<8x512xf32>
    %13 = tpu.matmul %12, %4, %cst {dimension_numbers = #tpu.dot_dimension_numbers<[1], [0], [0], [1], [0, 0, 1, 1], [], []>} : vector<8x128xbf16>, vector<128x512xbf16>, vector<8x512xf32> -> vector<8x512xf32>
    %14 = arith.addf %11, %13 : vector<8x512xf32>
    %15 = vector.extract_strided_slice %14 {offsets = [0, 0], sizes = [8, 384], strides = [1, 1]} : vector<8x512xf32> to vector<8x384xf32>
    %16 = arith.negf %15 : vector<8x384xf32>
    %17 = math.exp %16 : vector<8x384xf32>
    %cst_12 = arith.constant 1.000000e+00 : f32
    %18 = vector.broadcast %cst_12 : f32 to vector<8x384xf32>
    %19 = arith.addf %18, %17 : vector<8x384xf32>
    %20 = arith.divf %18, %19 : vector<8x384xf32>
    %21 = vector.extract_strided_slice %14 {offsets = [0, 384], sizes = [8, 128], strides = [1, 1]} : vector<8x512xf32> to vector<8x128xf32>
    %22 = math.tanh %21 : vector<8x128xf32>
    %23 = vector.extract_strided_slice %20 {offsets = [0, 128], sizes = [8, 128], strides = [1, 1]} : vector<8x384xf32> to vector<8x128xf32>
    %24 = arith.mulf %23, %6 : vector<8x128xf32>
    %25 = vector.extract_strided_slice %20 {offsets = [0, 0], sizes = [8, 128], strides = [1, 1]} : vector<8x384xf32> to vector<8x128xf32>
    %26 = arith.mulf %25, %22 : vector<8x128xf32>
    %27 = arith.addf %24, %26 : vector<8x128xf32>
    %28 = vector.extract_strided_slice %20 {offsets = [0, 256], sizes = [8, 128], strides = [1, 1]} : vector<8x384xf32> to vector<8x128xf32>
    %29 = math.tanh %27 : vector<8x128xf32>
    %30 = arith.mulf %28, %29 : vector<8x128xf32>
    %31 = vector.broadcast %8 : i32 to vector<8x1xi32>
    %32 = arith.cmpi slt, %31, %3 : vector<8x1xi32>
    %33 = vector.shape_cast %32 : vector<8x1xi1> to vector<8x1xi1>
    %34 = vector.broadcast %33 : vector<8x1xi1> to vector<8x128xi1>
    %35 = arith.select %34, %30, %5 : vector<8x128xi1>, vector<8x128xf32>
    %36 = vector.shape_cast %32 : vector<8x1xi1> to vector<8x1xi1>
    %37 = vector.broadcast %36 : vector<8x1xi1> to vector<8x128xi1>
    %38 = arith.select %37, %27, %6 : vector<8x128xi1>, vector<8x128xf32>
    %c8_i32_13 = arith.constant 8 : i32
    %39 = arith.muli %arg1, %c8_i32_13 : i32
    %c1_i32 = arith.constant 1 : i32
    %40 = arith.addi %39, %c1_i32 : i32
    %c1 = arith.constant 1 : index
    %c0_14 = arith.constant 0 : index
    %c0_15 = arith.constant 0 : index
    %41 = vector.load %arg4[%c1, %c0_14, %c0_15] : memref<8x8x512xbf16, #tpu.memory_space<vmem>>, vector<1x8x512xbf16>
    %42 = vector.shape_cast %41 : vector<1x8x512xbf16> to vector<8x512xbf16>
    %43 = arith.extf %42 : vector<8x512xbf16> to vector<8x512xf32>
    %44 = arith.truncf %35 : vector<8x128xf32> to vector<8x128xbf16>
    %cst_16 = arith.constant dense<0.000000e+00> : vector<8x512xf32>
    %45 = tpu.matmul %44, %4, %cst_16 {dimension_numbers = #tpu.dot_dimension_numbers<[1], [0], [0], [1], [0, 0, 1, 1], [], []>} : vector<8x128xbf16>, vector<128x512xbf16>, vector<8x512xf32> -> vector<8x512xf32>
    %46 = arith.addf %43, %45 : vector<8x512xf32>
    %47 = vector.extract_strided_slice %46 {offsets = [0, 0], sizes = [8, 384], strides = [1, 1]} : vector<8x512xf32> to vector<8x384xf32>
    %48 = arith.negf %47 : vector<8x384xf32>
    %49 = math.exp %48 : vector<8x384xf32>
    %cst_17 = arith.constant 1.000000e+00 : f32
    %50 = vector.broadcast %cst_17 : f32 to vector<8x384xf32>
    %51 = arith.addf %50, %49 : vector<8x384xf32>
    %52 = arith.divf %50, %51 : vector<8x384xf32>
    %53 = vector.extract_strided_slice %46 {offsets = [0, 384], sizes = [8, 128], strides = [1, 1]} : vector<8x512xf32> to vector<8x128xf32>
    %54 = math.tanh %53 : vector<8x128xf32>
    %55 = vector.extract_strided_slice %52 {offsets = [0, 128], sizes = [8, 128], strides = [1, 1]} : vector<8x384xf32> to vector<8x128xf32>
    %56 = arith.mulf %55, %38 : vector<8x128xf32>
    %57 = vector.extract_strided_slice %52 {offsets = [0, 0], sizes = [8, 128], strides = [1, 1]} : vector<8x384xf32> to vector<8x128xf32>
    %58 = arith.mulf %57, %54 : vector<8x128xf32>
    %59 = arith.addf %56, %58 : vector<8x128xf32>
    %60 = vector.extract_strided_slice %52 {offsets = [0, 256], sizes = [8, 128], strides = [1, 1]} : vector<8x384xf32> to vector<8x128xf32>
    %61 = math.tanh %59 : vector<8x128xf32>
    %62 = arith.mulf %60, %61 : vector<8x128xf32>
    %63 = vector.broadcast %40 : i32 to vector<8x1xi32>
    %64 = arith.cmpi slt, %63, %3 : vector<8x1xi32>
    %65 = vector.shape_cast %64 : vector<8x1xi1> to vector<8x1xi1>
    %66 = vector.broadcast %65 : vector<8x1xi1> to vector<8x128xi1>
    %67 = arith.select %66, %62, %35 : vector<8x128xi1>, vector<8x128xf32>
    %68 = vector.shape_cast %64 : vector<8x1xi1> to vector<8x1xi1>
    %69 = vector.broadcast %68 : vector<8x1xi1> to vector<8x128xi1>
    %70 = arith.select %69, %59, %38 : vector<8x128xi1>, vector<8x128xf32>
    %c8_i32_18 = arith.constant 8 : i32
    %71 = arith.muli %arg1, %c8_i32_18 : i32
    %c2_i32 = arith.constant 2 : i32
    %72 = arith.addi %71, %c2_i32 : i32
    %c2 = arith.constant 2 : index
    %c0_19 = arith.constant 0 : index
    %c0_20 = arith.constant 0 : index
    %73 = vector.load %arg4[%c2, %c0_19, %c0_20] : memref<8x8x512xbf16, #tpu.memory_space<vmem>>, vector<1x8x512xbf16>
    %74 = vector.shape_cast %73 : vector<1x8x512xbf16> to vector<8x512xbf16>
    %75 = arith.extf %74 : vector<8x512xbf16> to vector<8x512xf32>
    %76 = arith.truncf %67 : vector<8x128xf32> to vector<8x128xbf16>
    %cst_21 = arith.constant dense<0.000000e+00> : vector<8x512xf32>
    %77 = tpu.matmul %76, %4, %cst_21 {dimension_numbers = #tpu.dot_dimension_numbers<[1], [0], [0], [1], [0, 0, 1, 1], [], []>} : vector<8x128xbf16>, vector<128x512xbf16>, vector<8x512xf32> -> vector<8x512xf32>
    %78 = arith.addf %75, %77 : vector<8x512xf32>
    %79 = vector.extract_strided_slice %78 {offsets = [0, 0], sizes = [8, 384], strides = [1, 1]} : vector<8x512xf32> to vector<8x384xf32>
    %80 = arith.negf %79 : vector<8x384xf32>
    %81 = math.exp %80 : vector<8x384xf32>
    %cst_22 = arith.constant 1.000000e+00 : f32
    %82 = vector.broadcast %cst_22 : f32 to vector<8x384xf32>
    %83 = arith.addf %82, %81 : vector<8x384xf32>
    %84 = arith.divf %82, %83 : vector<8x384xf32>
    %85 = vector.extract_strided_slice %78 {offsets = [0, 384], sizes = [8, 128], strides = [1, 1]} : vector<8x512xf32> to vector<8x128xf32>
    %86 = math.tanh %85 : vector<8x128xf32>
    %87 = vector.extract_strided_slice %84 {offsets = [0, 128], sizes = [8, 128], strides = [1, 1]} : vector<8x384xf32> to vector<8x128xf32>
    %88 = arith.mulf %87, %70 : vector<8x128xf32>
    %89 = vector.extract_strided_slice %84 {offsets = [0, 0], sizes = [8, 128], strides = [1, 1]} : vector<8x384xf32> to vector<8x128xf32>
    %90 = arith.mulf %89, %86 : vector<8x128xf32>
    %91 = arith.addf %88, %90 : vector<8x128xf32>
    %92 = vector.extract_strided_slice %84 {offsets = [0, 256], sizes = [8, 128], strides = [1, 1]} : vector<8x384xf32> to vector<8x128xf32>
    %93 = math.tanh %91 : vector<8x128xf32>
    %94 = arith.mulf %92, %93 : vector<8x128xf32>
    %95 = vector.broadcast %72 : i32 to vector<8x1xi32>
    %96 = arith.cmpi slt, %95, %3 : vector<8x1xi32>
    %97 = vector.shape_cast %96 : vector<8x1xi1> to vector<8x1xi1>
    %98 = vector.broadcast %97 : vector<8x1xi1> to vector<8x128xi1>
    %99 = arith.select %98, %94, %67 : vector<8x128xi1>, vector<8x128xf32>
    %100 = vector.shape_cast %96 : vector<8x1xi1> to vector<8x1xi1>
    %101 = vector.broadcast %100 : vector<8x1xi1> to vector<8x128xi1>
    %102 = arith.select %101, %91, %70 : vector<8x128xi1>, vector<8x128xf32>
    %c8_i32_23 = arith.constant 8 : i32
    %103 = arith.muli %arg1, %c8_i32_23 : i32
    %c3_i32 = arith.constant 3 : i32
    %104 = arith.addi %103, %c3_i32 : i32
    %c3 = arith.constant 3 : index
    %c0_24 = arith.constant 0 : index
    %c0_25 = arith.constant 0 : index
    %105 = vector.load %arg4[%c3, %c0_24, %c0_25] : memref<8x8x512xbf16, #tpu.memory_space<vmem>>, vector<1x8x512xbf16>
    %106 = vector.shape_cast %105 : vector<1x8x512xbf16> to vector<8x512xbf16>
    %107 = arith.extf %106 : vector<8x512xbf16> to vector<8x512xf32>
    %108 = arith.truncf %99 : vector<8x128xf32> to vector<8x128xbf16>
    %cst_26 = arith.constant dense<0.000000e+00> : vector<8x512xf32>
    %109 = tpu.matmul %108, %4, %cst_26 {dimension_numbers = #tpu.dot_dimension_numbers<[1], [0], [0], [1], [0, 0, 1, 1], [], []>} : vector<8x128xbf16>, vector<128x512xbf16>, vector<8x512xf32> -> vector<8x512xf32>
    %110 = arith.addf %107, %109 : vector<8x512xf32>
    %111 = vector.extract_strided_slice %110 {offsets = [0, 0], sizes = [8, 384], strides = [1, 1]} : vector<8x512xf32> to vector<8x384xf32>
    %112 = arith.negf %111 : vector<8x384xf32>
    %113 = math.exp %112 : vector<8x384xf32>
    %cst_27 = arith.constant 1.000000e+00 : f32
    %114 = vector.broadcast %cst_27 : f32 to vector<8x384xf32>
    %115 = arith.addf %114, %113 : vector<8x384xf32>
    %116 = arith.divf %114, %115 : vector<8x384xf32>
    %117 = vector.extract_strided_slice %110 {offsets = [0, 384], sizes = [8, 128], strides = [1, 1]} : vector<8x512xf32> to vector<8x128xf32>
    %118 = math.tanh %117 : vector<8x128xf32>
    %119 = vector.extract_strided_slice %116 {offsets = [0, 128], sizes = [8, 128], strides = [1, 1]} : vector<8x384xf32> to vector<8x128xf32>
    %120 = arith.mulf %119, %102 : vector<8x128xf32>
    %121 = vector.extract_strided_slice %116 {offsets = [0, 0], sizes = [8, 128], strides = [1, 1]} : vector<8x384xf32> to vector<8x128xf32>
    %122 = arith.mulf %121, %118 : vector<8x128xf32>
    %123 = arith.addf %120, %122 : vector<8x128xf32>
    %124 = vector.extract_strided_slice %116 {offsets = [0, 256], sizes = [8, 128], strides = [1, 1]} : vector<8x384xf32> to vector<8x128xf32>
    %125 = math.tanh %123 : vector<8x128xf32>
    %126 = arith.mulf %124, %125 : vector<8x128xf32>
    %127 = vector.broadcast %104 : i32 to vector<8x1xi32>
    %128 = arith.cmpi slt, %127, %3 : vector<8x1xi32>
    %129 = vector.shape_cast %128 : vector<8x1xi1> to vector<8x1xi1>
    %130 = vector.broadcast %129 : vector<8x1xi1> to vector<8x128xi1>
    %131 = arith.select %130, %126, %99 : vector<8x128xi1>, vector<8x128xf32>
    %132 = vector.shape_cast %128 : vector<8x1xi1> to vector<8x1xi1>
    %133 = vector.broadcast %132 : vector<8x1xi1> to vector<8x128xi1>
    %134 = arith.select %133, %123, %102 : vector<8x128xi1>, vector<8x128xf32>
    %c8_i32_28 = arith.constant 8 : i32
    %135 = arith.muli %arg1, %c8_i32_28 : i32
    %c4_i32 = arith.constant 4 : i32
    %136 = arith.addi %135, %c4_i32 : i32
    %c4 = arith.constant 4 : index
    %c0_29 = arith.constant 0 : index
    %c0_30 = arith.constant 0 : index
    %137 = vector.load %arg4[%c4, %c0_29, %c0_30] : memref<8x8x512xbf16, #tpu.memory_space<vmem>>, vector<1x8x512xbf16>
    %138 = vector.shape_cast %137 : vector<1x8x512xbf16> to vector<8x512xbf16>
    %139 = arith.extf %138 : vector<8x512xbf16> to vector<8x512xf32>
    %140 = arith.truncf %131 : vector<8x128xf32> to vector<8x128xbf16>
    %cst_31 = arith.constant dense<0.000000e+00> : vector<8x512xf32>
    %141 = tpu.matmul %140, %4, %cst_31 {dimension_numbers = #tpu.dot_dimension_numbers<[1], [0], [0], [1], [0, 0, 1, 1], [], []>} : vector<8x128xbf16>, vector<128x512xbf16>, vector<8x512xf32> -> vector<8x512xf32>
    %142 = arith.addf %139, %141 : vector<8x512xf32>
    %143 = vector.extract_strided_slice %142 {offsets = [0, 0], sizes = [8, 384], strides = [1, 1]} : vector<8x512xf32> to vector<8x384xf32>
    %144 = arith.negf %143 : vector<8x384xf32>
    %145 = math.exp %144 : vector<8x384xf32>
    %cst_32 = arith.constant 1.000000e+00 : f32
    %146 = vector.broadcast %cst_32 : f32 to vector<8x384xf32>
    %147 = arith.addf %146, %145 : vector<8x384xf32>
    %148 = arith.divf %146, %147 : vector<8x384xf32>
    %149 = vector.extract_strided_slice %142 {offsets = [0, 384], sizes = [8, 128], strides = [1, 1]} : vector<8x512xf32> to vector<8x128xf32>
    %150 = math.tanh %149 : vector<8x128xf32>
    %151 = vector.extract_strided_slice %148 {offsets = [0, 128], sizes = [8, 128], strides = [1, 1]} : vector<8x384xf32> to vector<8x128xf32>
    %152 = arith.mulf %151, %134 : vector<8x128xf32>
    %153 = vector.extract_strided_slice %148 {offsets = [0, 0], sizes = [8, 128], strides = [1, 1]} : vector<8x384xf32> to vector<8x128xf32>
    %154 = arith.mulf %153, %150 : vector<8x128xf32>
    %155 = arith.addf %152, %154 : vector<8x128xf32>
    %156 = vector.extract_strided_slice %148 {offsets = [0, 256], sizes = [8, 128], strides = [1, 1]} : vector<8x384xf32> to vector<8x128xf32>
    %157 = math.tanh %155 : vector<8x128xf32>
    %158 = arith.mulf %156, %157 : vector<8x128xf32>
    %159 = vector.broadcast %136 : i32 to vector<8x1xi32>
    %160 = arith.cmpi slt, %159, %3 : vector<8x1xi32>
    %161 = vector.shape_cast %160 : vector<8x1xi1> to vector<8x1xi1>
    %162 = vector.broadcast %161 : vector<8x1xi1> to vector<8x128xi1>
    %163 = arith.select %162, %158, %131 : vector<8x128xi1>, vector<8x128xf32>
    %164 = vector.shape_cast %160 : vector<8x1xi1> to vector<8x1xi1>
    %165 = vector.broadcast %164 : vector<8x1xi1> to vector<8x128xi1>
    %166 = arith.select %165, %155, %134 : vector<8x128xi1>, vector<8x128xf32>
    %c8_i32_33 = arith.constant 8 : i32
    %167 = arith.muli %arg1, %c8_i32_33 : i32
    %c5_i32 = arith.constant 5 : i32
    %168 = arith.addi %167, %c5_i32 : i32
    %c5 = arith.constant 5 : index
    %c0_34 = arith.constant 0 : index
    %c0_35 = arith.constant 0 : index
    %169 = vector.load %arg4[%c5, %c0_34, %c0_35] : memref<8x8x512xbf16, #tpu.memory_space<vmem>>, vector<1x8x512xbf16>
    %170 = vector.shape_cast %169 : vector<1x8x512xbf16> to vector<8x512xbf16>
    %171 = arith.extf %170 : vector<8x512xbf16> to vector<8x512xf32>
    %172 = arith.truncf %163 : vector<8x128xf32> to vector<8x128xbf16>
    %cst_36 = arith.constant dense<0.000000e+00> : vector<8x512xf32>
    %173 = tpu.matmul %172, %4, %cst_36 {dimension_numbers = #tpu.dot_dimension_numbers<[1], [0], [0], [1], [0, 0, 1, 1], [], []>} : vector<8x128xbf16>, vector<128x512xbf16>, vector<8x512xf32> -> vector<8x512xf32>
    %174 = arith.addf %171, %173 : vector<8x512xf32>
    %175 = vector.extract_strided_slice %174 {offsets = [0, 0], sizes = [8, 384], strides = [1, 1]} : vector<8x512xf32> to vector<8x384xf32>
    %176 = arith.negf %175 : vector<8x384xf32>
    %177 = math.exp %176 : vector<8x384xf32>
    %cst_37 = arith.constant 1.000000e+00 : f32
    %178 = vector.broadcast %cst_37 : f32 to vector<8x384xf32>
    %179 = arith.addf %178, %177 : vector<8x384xf32>
    %180 = arith.divf %178, %179 : vector<8x384xf32>
    %181 = vector.extract_strided_slice %174 {offsets = [0, 384], sizes = [8, 128], strides = [1, 1]} : vector<8x512xf32> to vector<8x128xf32>
    %182 = math.tanh %181 : vector<8x128xf32>
    %183 = vector.extract_strided_slice %180 {offsets = [0, 128], sizes = [8, 128], strides = [1, 1]} : vector<8x384xf32> to vector<8x128xf32>
    %184 = arith.mulf %183, %166 : vector<8x128xf32>
    %185 = vector.extract_strided_slice %180 {offsets = [0, 0], sizes = [8, 128], strides = [1, 1]} : vector<8x384xf32> to vector<8x128xf32>
    %186 = arith.mulf %185, %182 : vector<8x128xf32>
    %187 = arith.addf %184, %186 : vector<8x128xf32>
    %188 = vector.extract_strided_slice %180 {offsets = [0, 256], sizes = [8, 128], strides = [1, 1]} : vector<8x384xf32> to vector<8x128xf32>
    %189 = math.tanh %187 : vector<8x128xf32>
    %190 = arith.mulf %188, %189 : vector<8x128xf32>
    %191 = vector.broadcast %168 : i32 to vector<8x1xi32>
    %192 = arith.cmpi slt, %191, %3 : vector<8x1xi32>
    %193 = vector.shape_cast %192 : vector<8x1xi1> to vector<8x1xi1>
    %194 = vector.broadcast %193 : vector<8x1xi1> to vector<8x128xi1>
    %195 = arith.select %194, %190, %163 : vector<8x128xi1>, vector<8x128xf32>
    %196 = vector.shape_cast %192 : vector<8x1xi1> to vector<8x1xi1>
    %197 = vector.broadcast %196 : vector<8x1xi1> to vector<8x128xi1>
    %198 = arith.select %197, %187, %166 : vector<8x128xi1>, vector<8x128xf32>
    %c8_i32_38 = arith.constant 8 : i32
    %199 = arith.muli %arg1, %c8_i32_38 : i32
    %c6_i32 = arith.constant 6 : i32
    %200 = arith.addi %199, %c6_i32 : i32
    %c6 = arith.constant 6 : index
    %c0_39 = arith.constant 0 : index
    %c0_40 = arith.constant 0 : index
    %201 = vector.load %arg4[%c6, %c0_39, %c0_40] : memref<8x8x512xbf16, #tpu.memory_space<vmem>>, vector<1x8x512xbf16>
    %202 = vector.shape_cast %201 : vector<1x8x512xbf16> to vector<8x512xbf16>
    %203 = arith.extf %202 : vector<8x512xbf16> to vector<8x512xf32>
    %204 = arith.truncf %195 : vector<8x128xf32> to vector<8x128xbf16>
    %cst_41 = arith.constant dense<0.000000e+00> : vector<8x512xf32>
    %205 = tpu.matmul %204, %4, %cst_41 {dimension_numbers = #tpu.dot_dimension_numbers<[1], [0], [0], [1], [0, 0, 1, 1], [], []>} : vector<8x128xbf16>, vector<128x512xbf16>, vector<8x512xf32> -> vector<8x512xf32>
    %206 = arith.addf %203, %205 : vector<8x512xf32>
    %207 = vector.extract_strided_slice %206 {offsets = [0, 0], sizes = [8, 384], strides = [1, 1]} : vector<8x512xf32> to vector<8x384xf32>
    %208 = arith.negf %207 : vector<8x384xf32>
    %209 = math.exp %208 : vector<8x384xf32>
    %cst_42 = arith.constant 1.000000e+00 : f32
    %210 = vector.broadcast %cst_42 : f32 to vector<8x384xf32>
    %211 = arith.addf %210, %209 : vector<8x384xf32>
    %212 = arith.divf %210, %211 : vector<8x384xf32>
    %213 = vector.extract_strided_slice %206 {offsets = [0, 384], sizes = [8, 128], strides = [1, 1]} : vector<8x512xf32> to vector<8x128xf32>
    %214 = math.tanh %213 : vector<8x128xf32>
    %215 = vector.extract_strided_slice %212 {offsets = [0, 128], sizes = [8, 128], strides = [1, 1]} : vector<8x384xf32> to vector<8x128xf32>
    %216 = arith.mulf %215, %198 : vector<8x128xf32>
    %217 = vector.extract_strided_slice %212 {offsets = [0, 0], sizes = [8, 128], strides = [1, 1]} : vector<8x384xf32> to vector<8x128xf32>
    %218 = arith.mulf %217, %214 : vector<8x128xf32>
    %219 = arith.addf %216, %218 : vector<8x128xf32>
    %220 = vector.extract_strided_slice %212 {offsets = [0, 256], sizes = [8, 128], strides = [1, 1]} : vector<8x384xf32> to vector<8x128xf32>
    %221 = math.tanh %219 : vector<8x128xf32>
    %222 = arith.mulf %220, %221 : vector<8x128xf32>
    %223 = vector.broadcast %200 : i32 to vector<8x1xi32>
    %224 = arith.cmpi slt, %223, %3 : vector<8x1xi32>
    %225 = vector.shape_cast %224 : vector<8x1xi1> to vector<8x1xi1>
    %226 = vector.broadcast %225 : vector<8x1xi1> to vector<8x128xi1>
    %227 = arith.select %226, %222, %195 : vector<8x128xi1>, vector<8x128xf32>
    %228 = vector.shape_cast %224 : vector<8x1xi1> to vector<8x1xi1>
    %229 = vector.broadcast %228 : vector<8x1xi1> to vector<8x128xi1>
    %230 = arith.select %229, %219, %198 : vector<8x128xi1>, vector<8x128xf32>
    %c8_i32_43 = arith.constant 8 : i32
    %231 = arith.muli %arg1, %c8_i32_43 : i32
    %c7_i32 = arith.constant 7 : i32
    %232 = arith.addi %231, %c7_i32 : i32
    %c7 = arith.constant 7 : index
    %c0_44 = arith.constant 0 : index
    %c0_45 = arith.constant 0 : index
    %233 = vector.load %arg4[%c7, %c0_44, %c0_45] : memref<8x8x512xbf16, #tpu.memory_space<vmem>>, vector<1x8x512xbf16>
    %234 = vector.shape_cast %233 : vector<1x8x512xbf16> to vector<8x512xbf16>
    %235 = arith.extf %234 : vector<8x512xbf16> to vector<8x512xf32>
    %236 = arith.truncf %227 : vector<8x128xf32> to vector<8x128xbf16>
    %cst_46 = arith.constant dense<0.000000e+00> : vector<8x512xf32>
    %237 = tpu.matmul %236, %4, %cst_46 {dimension_numbers = #tpu.dot_dimension_numbers<[1], [0], [0], [1], [0, 0, 1, 1], [], []>} : vector<8x128xbf16>, vector<128x512xbf16>, vector<8x512xf32> -> vector<8x512xf32>
    %238 = arith.addf %235, %237 : vector<8x512xf32>
    %239 = vector.extract_strided_slice %238 {offsets = [0, 0], sizes = [8, 384], strides = [1, 1]} : vector<8x512xf32> to vector<8x384xf32>
    %240 = arith.negf %239 : vector<8x384xf32>
    %241 = math.exp %240 : vector<8x384xf32>
    %cst_47 = arith.constant 1.000000e+00 : f32
    %242 = vector.broadcast %cst_47 : f32 to vector<8x384xf32>
    %243 = arith.addf %242, %241 : vector<8x384xf32>
    %244 = arith.divf %242, %243 : vector<8x384xf32>
    %245 = vector.extract_strided_slice %238 {offsets = [0, 384], sizes = [8, 128], strides = [1, 1]} : vector<8x512xf32> to vector<8x128xf32>
    %246 = math.tanh %245 : vector<8x128xf32>
    %247 = vector.extract_strided_slice %244 {offsets = [0, 128], sizes = [8, 128], strides = [1, 1]} : vector<8x384xf32> to vector<8x128xf32>
    %248 = arith.mulf %247, %230 : vector<8x128xf32>
    %249 = vector.extract_strided_slice %244 {offsets = [0, 0], sizes = [8, 128], strides = [1, 1]} : vector<8x384xf32> to vector<8x128xf32>
    %250 = arith.mulf %249, %246 : vector<8x128xf32>
    %251 = arith.addf %248, %250 : vector<8x128xf32>
    %252 = vector.extract_strided_slice %244 {offsets = [0, 256], sizes = [8, 128], strides = [1, 1]} : vector<8x384xf32> to vector<8x128xf32>
    %253 = math.tanh %251 : vector<8x128xf32>
    %254 = arith.mulf %252, %253 : vector<8x128xf32>
    %255 = vector.broadcast %232 : i32 to vector<8x1xi32>
    %256 = arith.cmpi slt, %255, %3 : vector<8x1xi32>
    %257 = vector.shape_cast %256 : vector<8x1xi1> to vector<8x1xi1>
    %258 = vector.broadcast %257 : vector<8x1xi1> to vector<8x128xi1>
    %259 = arith.select %258, %254, %227 : vector<8x128xi1>, vector<8x128xf32>
    %260 = vector.shape_cast %256 : vector<8x1xi1> to vector<8x1xi1>
    %261 = vector.broadcast %260 : vector<8x1xi1> to vector<8x128xi1>
    %262 = arith.select %261, %251, %230 : vector<8x128xi1>, vector<8x128xf32>
    %c0_48 = arith.constant 0 : index
    %c0_49 = arith.constant 0 : index
    %263 = vector.load %arg16[%c0_48, %c0_49] : memref<8x128xf32, #tpu.memory_space<vmem>>, vector<8x128xf32>
    tpu.vector_store %arg16[%c0_48, %c0_49], %259 {strides = array<i32>} : memref<8x128xf32, #tpu.memory_space<vmem>>, vector<8x128xf32>,
    %c0_50 = arith.constant 0 : index
    %c0_51 = arith.constant 0 : index
    %264 = vector.load %arg17[%c0_50, %c0_51] : memref<8x128xf32, #tpu.memory_space<vmem>>, vector<8x128xf32>
    tpu.vector_store %arg17[%c0_50, %c0_51], %262 {strides = array<i32>} : memref<8x128xf32, #tpu.memory_space<vmem>>, vector<8x128xf32>,
    %c0_i32_52 = arith.constant 0 : i32
    %265 = arith.cmpi eq, %arg1, %c0_i32_52 : i32
    %266 = arith.extui %265 : i1 to i32
    %c0_i32_53 = arith.constant 0 : i32
    %267 = arith.cmpi ne, %266, %c0_i32_53 : i32
    scf.if %267 {
      %c0_54 = arith.constant 0 : index
      %c0_55 = arith.constant 0 : index
      %268 = vector.load %arg3[%c0_54, %c0_55] : memref<8x1xf32, #tpu.memory_space<vmem>>, vector<8x1xf32>
      %c0_56 = arith.constant 0 : index
      %c0_57 = arith.constant 0 : index
      %269 = vector.load %arg16[%c0_56, %c0_57] : memref<8x128xf32, #tpu.memory_space<vmem>>, vector<8x128xf32>
      %270 = vector.broadcast %268 : vector<8x1xf32> to vector<8x128xf32>
      %271 = arith.mulf %270, %269 : vector<8x128xf32>
      %c0_58 = arith.constant 0 : index
      %c0_59 = arith.constant 0 : index
      %272 = vector.load %arg5[%c0_58, %c0_59] : memref<8x512xbf16, #tpu.memory_space<vmem>>, vector<8x512xbf16>
      %c0_60 = arith.constant 0 : index
      %c0_61 = arith.constant 0 : index
      %273 = vector.load %arg10[%c0_60, %c0_61] : memref<8x128xf32, #tpu.memory_space<vmem>>, vector<8x128xf32>
      %c0_62 = arith.constant 0 : index
      %c0_63 = arith.constant 0 : index
      %274 = vector.load %arg11[%c0_62, %c0_63] : memref<8x128xf32, #tpu.memory_space<vmem>>, vector<8x128xf32>
      %c0_64 = arith.constant 0 : index
      %c0_65 = arith.constant 0 : index
      %275 = vector.load %arg7[%c0_64, %c0_65] : memref<128x512xbf16, #tpu.memory_space<vmem>>, vector<128x512xbf16>
      %276 = arith.extf %272 : vector<8x512xbf16> to vector<8x512xf32>
      %277 = arith.truncf %273 : vector<8x128xf32> to vector<8x128xbf16>
      %cst_66 = arith.constant dense<0.000000e+00> : vector<8x512xf32>
      %278 = tpu.matmul %277, %275, %cst_66 {dimension_numbers = #tpu.dot_dimension_numbers<[1], [0], [0], [1], [0, 0, 1, 1], [], []>} : vector<8x128xbf16>, vector<128x512xbf16>, vector<8x512xf32> -> vector<8x512xf32>
      %279 = arith.addf %276, %278 : vector<8x512xf32>
      %280 = vector.extract_strided_slice %279 {offsets = [0, 0], sizes = [8, 384], strides = [1, 1]} : vector<8x512xf32> to vector<8x384xf32>
      %281 = arith.negf %280 : vector<8x384xf32>
      %282 = math.exp %281 : vector<8x384xf32>
      %cst_67 = arith.constant 1.000000e+00 : f32
      %283 = vector.broadcast %cst_67 : f32 to vector<8x384xf32>
      %284 = arith.addf %283, %282 : vector<8x384xf32>
      %285 = arith.divf %283, %284 : vector<8x384xf32>
      %286 = vector.extract_strided_slice %279 {offsets = [0, 384], sizes = [8, 128], strides = [1, 1]} : vector<8x512xf32> to vector<8x128xf32>
      %287 = math.tanh %286 : vector<8x128xf32>
      %288 = vector.extract_strided_slice %285 {offsets = [0, 128], sizes = [8, 128], strides = [1, 1]} : vector<8x384xf32> to vector<8x128xf32>
      %289 = arith.mulf %288, %274 : vector<8x128xf32>
      %290 = vector.extract_strided_slice %285 {offsets = [0, 0], sizes = [8, 128], strides = [1, 1]} : vector<8x384xf32> to vector<8x128xf32>
      %291 = arith.mulf %290, %287 : vector<8x128xf32>
      %292 = arith.addf %289, %291 : vector<8x128xf32>
      %293 = vector.extract_strided_slice %285 {offsets = [0, 256], sizes = [8, 128], strides = [1, 1]} : vector<8x384xf32> to vector<8x128xf32>
      %294 = math.tanh %292 : vector<8x128xf32>
      %295 = arith.mulf %293, %294 : vector<8x128xf32>
      %296 = vector.broadcast %268 : vector<8x1xf32> to vector<8x128xf32>
      %297 = arith.mulf %296, %295 : vector<8x128xf32>
      %c0_68 = arith.constant 0 : index
      %c0_69 = arith.constant 0 : index
      %298 = vector.load %arg12[%c0_68, %c0_69] : memref<128x128xf32, #tpu.memory_space<vmem>>, vector<128x128xf32>
      %cst_70 = arith.constant dense<0.000000e+00> : vector<8x128xf32>
      %299 = tpu.matmul %271, %298, %cst_70 {dimension_numbers = #tpu.dot_dimension_numbers<[1], [0], [0], [1], [0, 0, 1, 1], [], []>} : vector<8x128xf32>, vector<128x128xf32>, vector<8x128xf32> -> vector<8x128xf32>
      %c0_71 = arith.constant 0 : index
      %c0_72 = arith.constant 0 : index
      %300 = vector.load %arg13[%c0_71, %c0_72] : memref<128x128xf32, #tpu.memory_space<vmem>>, vector<128x128xf32>
      %cst_73 = arith.constant dense<0.000000e+00> : vector<8x128xf32>
      %301 = tpu.matmul %297, %300, %cst_73 {dimension_numbers = #tpu.dot_dimension_numbers<[1], [0], [0], [1], [0, 0, 1, 1], [], []>} : vector<8x128xf32>, vector<128x128xf32>, vector<8x128xf32> -> vector<8x128xf32>
      %302 = arith.addf %299, %301 : vector<8x128xf32>
      %c0_74 = arith.constant 0 : index
      %c0_75 = arith.constant 0 : index
      %303 = vector.load %arg14[%c0_74, %c0_75] : memref<1x128xf32, #tpu.memory_space<vmem>>, vector<1x128xf32>
      %304 = vector.broadcast %303 : vector<1x128xf32> to vector<8x128xf32>
      %305 = arith.addf %302, %304 : vector<8x128xf32>
      %cst_76 = arith.constant dense<0xFF800000> : vector<8xf32>
      %306 = vector.multi_reduction <maximumf>, %305, %cst_76 [1] : vector<8x128xf32> to vector<8xf32>
      %307 = vector.shape_cast %306 : vector<8xf32> to vector<8x1xf32>
      %308 = vector.broadcast %307 : vector<8x1xf32> to vector<8x128xf32>
      %309 = arith.subf %305, %308 : vector<8x128xf32>
      %310 = math.exp %309 : vector<8x128xf32>
      %cst_77 = arith.constant dense<0.000000e+00> : vector<8xf32>
      %311 = vector.multi_reduction <add>, %310, %cst_77 [1] : vector<8x128xf32> to vector<8xf32>
      %312 = vector.shape_cast %311 : vector<8xf32> to vector<8x1xf32>
      %313 = tpu.reciprocal %312 {approx = true} : vector<8x1xf32> -> vector<8x1xf32>
      %314 = vector.broadcast %313 : vector<8x1xf32> to vector<8x128xf32>
      %315 = arith.mulf %310, %314 : vector<8x128xf32>
      %c0_78 = arith.constant 0 : index
      %c0_79 = arith.constant 0 : index
      %316 = vector.load %arg15[%c0_78, %c0_79] : memref<8x128xf32, #tpu.memory_space<vmem>>, vector<8x128xf32>
      tpu.vector_store %arg15[%c0_78, %c0_79], %315 {strides = array<i32>} : memref<8x128xf32, #tpu.memory_space<vmem>>, vector<8x128xf32>,
    } else {
    }
    return
  }
  func.func @transform_0(%arg0: i32, %arg1: i32) -> (i32, i32) {
    %c0_i32 = arith.constant 0 : i32
    %c0_i32_0 = arith.constant 0 : i32
    return %arg0, %c0_i32 : i32, i32
  }
  func.func @transform_1(%arg0: i32, %arg1: i32) -> (i32, i32) {
    %c0_i32 = arith.constant 0 : i32
    %c0_i32_0 = arith.constant 0 : i32
    return %arg0, %c0_i32 : i32, i32
  }
  func.func @transform_2(%arg0: i32, %arg1: i32) -> (i32, i32, i32) {
    %c0_i32 = arith.constant 0 : i32
    %c0_i32_0 = arith.constant 0 : i32
    return %arg1, %arg0, %c0_i32 : i32, i32, i32
  }
  func.func @transform_3(%arg0: i32, %arg1: i32) -> (i32, i32) {
    %c0_i32 = arith.constant 0 : i32
    %c0_i32_0 = arith.constant 0 : i32
    return %arg0, %c0_i32 : i32, i32
  }
  func.func @transform_4(%arg0: i32, %arg1: i32) -> (i32, i32) {
    %c0_i32 = arith.constant 0 : i32
    %c0_i32_0 = arith.constant 0 : i32
    %c0_i32_1 = arith.constant 0 : i32
    return %c0_i32, %c0_i32_0 : i32, i32
  }
  func.func @transform_5(%arg0: i32, %arg1: i32) -> (i32, i32) {
    %c0_i32 = arith.constant 0 : i32
    %c0_i32_0 = arith.constant 0 : i32
    %c0_i32_1 = arith.constant 0 : i32
    return %c0_i32, %c0_i32_0 : i32, i32
  }
  func.func @transform_6(%arg0: i32, %arg1: i32) -> (i32, i32) {
    %c0_i32 = arith.constant 0 : i32
    %c0_i32_0 = arith.constant 0 : i32
    return %arg0, %c0_i32 : i32, i32
  }
  func.func @transform_7(%arg0: i32, %arg1: i32) -> (i32, i32) {
    %c0_i32 = arith.constant 0 : i32
    %c0_i32_0 = arith.constant 0 : i32
    return %arg0, %c0_i32 : i32, i32
  }
  func.func @transform_8(%arg0: i32, %arg1: i32) -> (i32, i32) {
    %c0_i32 = arith.constant 0 : i32
    %c0_i32_0 = arith.constant 0 : i32
    return %arg0, %c0_i32 : i32, i32
  }
  func.func @transform_9(%arg0: i32, %arg1: i32) -> (i32, i32) {
    %c0_i32 = arith.constant 0 : i32
    %c0_i32_0 = arith.constant 0 : i32
    return %arg0, %c0_i32 : i32, i32
  }
  func.func @transform_10(%arg0: i32, %arg1: i32) -> (i32, i32) {
    %c0_i32 = arith.constant 0 : i32
    %c0_i32_0 = arith.constant 0 : i32
    %c0_i32_1 = arith.constant 0 : i32
    return %c0_i32, %c0_i32_0 : i32, i32
  }
  func.func @transform_11(%arg0: i32, %arg1: i32) -> (i32, i32) {
    %c0_i32 = arith.constant 0 : i32
    %c0_i32_0 = arith.constant 0 : i32
    %c0_i32_1 = arith.constant 0 : i32
    return %c0_i32, %c0_i32_0 : i32, i32
  }
  func.func @transform_12(%arg0: i32, %arg1: i32) -> (i32, i32) {
    %c0_i32 = arith.constant 0 : i32
    %c0_i32_0 = arith.constant 0 : i32
    %c0_i32_1 = arith.constant 0 : i32
    return %c0_i32, %c0_i32_0 : i32, i32
  }
  func.func @transform_13(%arg0: i32, %arg1: i32) -> (i32, i32) {
    %c0_i32 = arith.constant 0 : i32
    %c0_i32_0 = arith.constant 0 : i32
    return %arg0, %c0_i32 : i32, i32
  }
}

</mosaic_0001>

<bundles_post_ra>
// kernel: bilstm_forward.1
= control target key start
LH: loop header
LB: loop body
LE: loop exit
PB: predicated region body
PF: predicated region fallthrough
CT: control target
= control target key end

     0   :  { %v2338_v1 = vmov 0   ;;  %vm2340_vm15 = vmmov 0   ;;  %s3343_s4 = inlined_call_operand.vmem [shape: bf16[128,512], index: 4, kind: input, shape index: {}]   ;;  %s3344_s0 = inlined_call_operand.vmem [shape: s32[8,1], index: 0, kind: input, shape index: {}]   ;;  %s3345_s6 = inlined_call_operand.vmem [shape: f32[8,128], index: 6, kind: input, shape index: {}]   ;;  %s3346_s1 = inlined_call_operand.vmem [shape: f32[8,1], index: 1, kind: input, shape index: {}]   ;;  %s3347_s2 = inlined_call_operand.vmem [shape: bf16[8,8,512], index: 2, kind: input, shape index: {}]   ;;  %s3348_s7 = inlined_call_operand.vmem [shape: f32[8,128], index: 7, kind: input, shape index: {}]   ;;  %s3349_s5 = inlined_call_operand.vmem [shape: bf16[128,512], index: 5, kind: input, shape index: {}]   ;;  %s3350_s8 = inlined_call_operand.vmem [shape: f32[8,128], index: 8, kind: input, shape index: {}]   ;;  %s3351_s10 = inlined_call_operand.vmem [shape: f32[128,128], index: 10, kind: input, shape index: {}]   ;;  %s3352_s11 = inlined_call_operand.vmem [shape: f32[128,128], index: 11, kind: input, shape index: {}]   ;;  %s3353_s3 = inlined_call_operand.vmem [shape: bf16[8,512], index: 3, kind: input, shape index: {}]   ;;  %s3354_s9 = inlined_call_operand.vmem [shape: f32[8,128], index: 9, kind: input, shape index: {}]   ;;  %s3355_s12 = inlined_call_operand.vmem [shape: f32[1,128], index: 12, kind: input, shape index: {}]   ;;  %s3356_s13 = inlined_call_operand.vmem [shape: f32[8,128], index: 13, kind: output, shape index: {}]  }
   0x1   :  { %v2415_v0 = vld [vmem:[%s3343_s4 + $0x4] ss:$16 sps:$4 sm:$0xff]   ;;  %288 = vmatprep.mubr.bf16.mxu0 %v2338_v1  ;;  %329 = vmatprep.mubr.bf16.mxu1 %v2338_v1  ;;  %v2422_v2 = vld [vmem:[%s3343_s4] ss:$16 sps:$4 sm:$0xff]   ;;  %v2447_v6 = vld [vmem:[%s3343_s4 + $0xc] ss:$16 sps:$4 sm:$0xff]  }
   0x2   :  { %2060 = vset.pattern.permute.xlu0 %v2338_v1  ;;  %2061 = vset.pattern.permute.xlu1 %v2338_v1  ;;  %v2430_v3 = vld [vmem:[%s3343_s4 + $0x24] ss:$16 sps:$4 sm:$0xff]   ;;  %v2436_v4 = vld [vmem:[%s3343_s4 + $0x20] ss:$16 sps:$4 sm:$0xff]   ;;  %v2452_v7 = vld [vmem:[%s3343_s4 + $0x8] ss:$16 sps:$4 sm:$0xff]  }
   0x3   :  { %256 = vmatprep.subr.bf16.mxu0 %v2415_v0  ;;  %v2442_v5 = vld [vmem:[%s3343_s4 + $0x44] ss:$16 sps:$4 sm:$0xff]   ;;  %v2458_v8 = vld [vmem:[%s3343_s4 + $0x40] ss:$16 sps:$4 sm:$0xff]   ;;  %297 = vmatprep.subr.bf16.mxu1 %v2447_v6  ;;  %v2471_v10 = vld [vmem:[%s3343_s4 + $0x2c] ss:$16 sps:$4 sm:$0xff]  }
   0x4   :  { %257 = vmatpush1.bf16.msra.mxu0 %v2422_v2  ;;  %v2465_v9 = vld [vmem:[%s3343_s4 + $0x64] ss:$16 sps:$4 sm:$0xff]   ;;  %298 = vmatpush1.bf16.msra.mxu1 %v2452_v7  ;;  %v2476_v11 = vld [vmem:[%s3343_s4 + $0x28] ss:$16 sps:$4 sm:$0xff]   ;;  %v2483_v12 = vld [vmem:[%s3343_s4 + $0x60] ss:$16 sps:$4 sm:$0xff]  }
   0x5   :  { %258 = vmatprep.subr.bf16.mxu0 %v2430_v3  ;;  %299 = vmatprep.subr.bf16.mxu1 %v2471_v10  ;;  %v2488_v13 = vld [vmem:[%s3343_s4 + $0x84] ss:$16 sps:$4 sm:$0xff]   ;;  %v2493_v14 = vld [vmem:[%s3343_s4 + $0x4c] ss:$16 sps:$4 sm:$0xff]   ;;  %v2500_v15 = vld [vmem:[%s3343_s4 + $0x48] ss:$16 sps:$4 sm:$0xff]  }
   0x6   :  { %v2506_v16 = vld [vmem:[%s3343_s4 + $0x6c] ss:$16 sps:$4 sm:$0xff]   ;;  %v2512_v17 = vld [vmem:[%s3343_s4 + $0x80] ss:$16 sps:$4 sm:$0xff]   ;;  %v2518_v18 = vld [vmem:[%s3343_s4 + $0xa4] ss:$16 sps:$4 sm:$0xff]  }
   0x7   :  { %v2524_v19 = vld [vmem:[%s3343_s4 + $0x68] ss:$16 sps:$4 sm:$0xff]   ;;  %v2530_v20 = vld [vmem:[%s3343_s4 + $0x8c] ss:$16 sps:$4 sm:$0xff]   ;;  %v2535_v21 = vld [vmem:[%s3343_s4 + $0xa0] ss:$16 sps:$4 sm:$0xff]  }
   0x8   :  { %259 = vmatpush1.bf16.msra.mxu0 %v2436_v4  ;;  %300 = vmatpush1.bf16.msra.mxu1 %v2476_v11  ;;  %v2541_v22 = vld [vmem:[%s3343_s4 + $0xc4] ss:$16 sps:$4 sm:$0xff]   ;;  %v2548_v23 = vld [vmem:[%s3343_s4 + $0x88] ss:$16 sps:$4 sm:$0xff]   ;;  %v2554_v24 = vld [vmem:[%s3343_s4 + $0xac] ss:$16 sps:$4 sm:$0xff]  }
   0x9   :  { %260 = vmatprep.subr.bf16.mxu0 %v2442_v5  ;;  %301 = vmatprep.subr.bf16.mxu1 %v2493_v14  ;;  %v2559_v25 = vld [vmem:[%s3344_s0] sm:$0xff]  ;;  %v2580_v29 = vld [vmem:[%s3343_s4 + $0xa8] ss:$16 sps:$4 sm:$0xff]   ;;  %v2586_v30 = vld [vmem:[%s3343_s4 + $0xcc] ss:$16 sps:$4 sm:$0xff]  }
   0xa   :  { %vm1825_vm0 = vcmp.gt.s32.totalorder %v2559_v25, 0  ;;  %v2566_v26 = vld [vmem:[%s3343_s4 + $0xc0] ss:$16 sps:$4 sm:$0xff]   ;;  %vm1831_vm1 = vcmp.gt.s32.totalorder %v2559_v25, 1  ;;  %v2574_v28 = vld [vmem:[%s3343_s4 + $0xe4] ss:$16 sps:$4 sm:$0xff]  }
   0xb   :  { %v368_v27 = vsel %vm1825_vm0, 1, %v2338_v1  ;;  %v496_v31 = vsel %vm1831_vm1, 1, %v2338_v1  ;;  %v2593_v32 = vld [vmem:[%s3343_s4 + $0xe0] ss:$16 sps:$4 sm:$0xff]   ;;  %vm1849_vm2 = vcmp.gt.s32.totalorder %v2559_v25, 4  ;;  %vm1861_vm3 = vcmp.gt.s32.totalorder %v2559_v25, 6 }
   0xc   :  { %261 = vmatpush1.bf16.msra.mxu0 %v2458_v8  ;;  %302 = vmatpush1.bf16.msra.mxu1 %v2500_v15  ;;  %v2598_v33 = vld [vmem:[%s3345_s6] sm:$0xff]  ;;  %v2606_v34 = vld [vmem:[%s3343_s4 + $0xc8] ss:$16 sps:$4 sm:$0xff]   ;;  %v2612_v35 = vld [vmem:[%s3343_s4 + $0xec] ss:$16 sps:$4 sm:$0xff]   ;;  %v880_v37 = vsel %vm1849_vm2, 1, %v2338_v1 }
   0xd   :  { %262 = vmatprep.subr.bf16.mxu0 %v2465_v9  ;;  %303 = vmatprep.subr.bf16.mxu1 %v2506_v16  ;;  %v95_v36 = vpack.c.bf16 %v2598_v33, %v2598_v33  ;;  %v2623_v38 = vld [vmem:[%s3343_s4 + $0xe8] ss:$16 sps:$4 sm:$0xff]   ;;  %v1136_v39 = vsel %vm1861_vm3, 1, %v2338_v1  ;;  %v1276_v40 = vld [vmem:[%s3346_s1] sm:$0xff]  ;;  %vm1837_vm5 = vcmp.gt.s32.totalorder %v2559_v25, 2  ;;  %vm1843_vm6 = vcmp.gt.s32.totalorder %v2559_v25, 3 }
   0xe   :  { %370 = vperm.xlu0 %2060, %v368_v27   ;;  %v89_v41 = vld [vmem:[%s3347_s2] sm:$0xff]  ;;  %v90_v45 = vld [vmem:[%s3347_s2 + $0x8] sm:$0xff]  ;;  %vm1855_vm7 = vcmp.gt.s32.totalorder %v2559_v25, 5  ;;  %vm1867_vm8 = vcmp.gt.s32.totalorder %v2559_v25, 7 }
   0xf   :  { %v91_v42 = vunpack.c.l.bf16 %v89_v41  ;;  %v92_v43 = vunpack.c.h.bf16 %v89_v41  ;;  %v93_v52 = vunpack.c.l.bf16 %v90_v45  ;;  %v94_v58 = vunpack.c.h.bf16 %v90_v45 }
  0x10   :  { %263 = vmatpush1.bf16.msra.mxu0 %v2483_v12  ;;  %304 = vmatpush1.bf16.msra.mxu1 %v2524_v19 }
  0x11   :  { %264 = vmatprep.subr.bf16.mxu0 %v2488_v13  ;;  %305 = vmatprep.subr.bf16.mxu1 %v2530_v20 }
  0x12   :  { %498 = vperm.xlu0 %2060, %v496_v31  }
  0x14   :  { %265 = vmatpush1.bf16.msra.mxu0 %v2512_v17  ;;  %306 = vmatpush1.bf16.msra.mxu1 %v2548_v23 }
  0x15   :  { %266 = vmatprep.subr.bf16.mxu0 %v2518_v18  ;;  %307 = vmatprep.subr.bf16.mxu1 %v2554_v24 }
  0x16   :  { %882 = vperm.xlu0 %2060, %v880_v37  }
  0x18   :  { %267 = vmatpush1.bf16.msra.mxu0 %v2535_v21  ;;  %308 = vmatpush1.bf16.msra.mxu1 %v2580_v29 }
  0x19   :  { %268 = vmatprep.subr.bf16.mxu0 %v2541_v22  ;;  %309 = vmatprep.subr.bf16.mxu1 %v2586_v30 }
  0x1a   :  { %1138 = vperm.xlu0 %2060, %v1136_v39   ;;  %v51_v39 = vld [vmem:[%s3348_s7] sm:$0xff] }
  0x1c   :  { %269 = vmatpush1.bf16.msra.mxu0 %v2566_v26  ;;  %310 = vmatpush1.bf16.msra.mxu1 %v2606_v34 }
  0x1d   :  { %270 = vmatprep.subr.bf16.mxu0 %v2574_v28  ;;  %311 = vmatprep.subr.bf16.mxu1 %v2612_v35 }
  0x1e   :  { %1280 = vperm.xlu0 %2060, %v1276_v40  }
  0x20   :  { %271 = vmatpush1.bf16.msra.mxu0 %v2593_v32  ;;  %312 = vmatpush1.bf16.msra.mxu1 %v2623_v38 }
  0x21   :  { %384 = vmatprep.subr.bf16.mxu0 %v2415_v0  ;;  %425 = vmatprep.subr.bf16.mxu1 %v2447_v6 }
  0x23   :  { %289 = vmatmul.mubr.bf16.vlgmr.msra.gmra.mrb[0].mxu0 %v95_v36  ;;  %330 = vmatmul.mubr.bf16.vlgmr.msra.gmra.mrb[0].mxu1 %v95_v36 }
  0x24   :  { %385 = vmatpush1.bf16.msra.mxu0 %v2422_v2  ;;  %416 = vmatprep.mubr.bf16.mxu0 %v2338_v1 }
  0x25   :  { %386 = vmatprep.subr.bf16.mxu0 %v2430_v3  ;;  %426 = vmatpush1.bf16.msra.mxu1 %v2452_v7 }
  0x26   :  { %427 = vmatprep.subr.bf16.mxu1 %v2471_v10  ;;  %457 = vmatprep.mubr.bf16.mxu1 %v2338_v1 }
  0x28   :  { %387 = vmatpush1.bf16.msra.mxu0 %v2436_v4 }
  0x29   :  { %388 = vmatprep.subr.bf16.mxu0 %v2442_v5  ;;  %428 = vmatpush1.bf16.msra.mxu1 %v2476_v11 }
  0x2a   :  { %429 = vmatprep.subr.bf16.mxu1 %v2493_v14 }
  0x2c   :  { %389 = vmatpush1.bf16.msra.mxu0 %v2458_v8 }
  0x2d   :  { %390 = vmatprep.subr.bf16.mxu0 %v2465_v9  ;;  %430 = vmatpush1.bf16.msra.mxu1 %v2500_v15 }
  0x2e   :  { %431 = vmatprep.subr.bf16.mxu1 %v2506_v16 }
  0x30   :  { %391 = vmatpush1.bf16.msra.mxu0 %v2483_v12 }
  0x31   :  { %392 = vmatprep.subr.bf16.mxu0 %v2488_v13  ;;  %432 = vmatpush1.bf16.msra.mxu1 %v2524_v19 }
  0x32   :  { %433 = vmatprep.subr.bf16.mxu1 %v2530_v20 }
  0x34   :  { %393 = vmatpush1.bf16.msra.mxu0 %v2512_v17 }
  0x35   :  { %394 = vmatprep.subr.bf16.mxu0 %v2518_v18  ;;  %434 = vmatpush1.bf16.msra.mxu1 %v2548_v23 }
  0x36   :  { %435 = vmatprep.subr.bf16.mxu1 %v2554_v24 }
  0x38   :  { %395 = vmatpush1.bf16.msra.mxu0 %v2535_v21 }
  0x39   :  { %396 = vmatprep.subr.bf16.mxu0 %v2541_v22  ;;  %436 = vmatpush1.bf16.msra.mxu1 %v2580_v29 }
  0x3a   :  { %437 = vmatprep.subr.bf16.mxu1 %v2586_v30 }
  0x3c   :  { %397 = vmatpush1.bf16.msra.mxu0 %v2566_v26 }
  0x3d   :  { %398 = vmatprep.subr.bf16.mxu0 %v2574_v28  ;;  %438 = vmatpush1.bf16.msra.mxu1 %v2606_v34 }
  0x3e   :  { %439 = vmatprep.subr.bf16.mxu1 %v2612_v35 }
  0x40   :  { %399 = vmatpush1.bf16.msra.mxu0 %v2593_v32 }
  0x41   :  { %512 = vmatprep.subr.bf16.mxu0 %v2415_v0  ;;  %440 = vmatpush1.bf16.msra.mxu1 %v2623_v38 }
  0x42   :  { %553 = vmatprep.subr.bf16.mxu1 %v2447_v6 }
  0x8d   :  { %v371_v45 = vpop.permute.xlu0 %370 }
  0x8e   :  { %vm372_vm4 = vcmp.eq.s32.totalorder %v371_v45, 1 }
  0xf6   :  { %v290_v44 = vpop.f32.mrb[0].mxu0  ;;  %v331_v54 = vpop.f32.mrb[0].mxu1 }
  0xf7   :  { %v338_v46 = vadd.f32 %v290_v44, %v91_v42  ;;  %v292_v47 = vpop.f32.mrb[1].mxu0  ;;  %v333_v55 = vpop.f32.mrb[1].mxu1  ;;  %v340_v56 = vadd.f32 %v331_v54, %v93_v52  ;;  %v1008_v54 = vsel %vm1855_vm7, 1, %v2338_v1 }
  0xf8   :  { %v339_v48 = vadd.f32 %v292_v47, %v92_v43  ;;  %v294_v49 = vpop.f32.mrb[2].mxu0  ;;  %v335_v57 = vpop.f32.mrb[2].mxu1  ;;  %v341_v61 = vadd.f32 %v333_v55, %v94_v58  ;;  %v1264_v55 = vsel %vm1867_vm8, 1, %v2338_v1 }
  0xf9   :  { %v1822_v50 = vmul.f32 -1.442695, %v338_v46  ;;  %v295_v51 = vpop.f32.mrb[3].mxu0  ;;  %v336_v59 = vpop.f32.mrb[3].mxu1  ;;  %v1824_v60 = vmul.f32 -1.442695, %v340_v56 }
  0xfa   :  { %v1823_v53 = vmul.f32 -1.442695, %v339_v48  ;;  %v1826_v56 = vld [vmem:[%s3347_s2 + $0x10] sm:$0xff] }
  0xfb   :  { %2158 = vpow2.f32 %v1822_v50  ;;  %v379_v57 = vunpack.c.l.bf16 %v1826_v56  ;;  %v380_v58 = vunpack.c.h.bf16 %v1826_v56 }
  0xfc   :  { %2160 = vpow2.f32 %v1823_v53  ;;  %v752_v53 = vsel %vm1843_vm6, 1, %v2338_v1 }
  0xfd   :  { %2162 = vpow2.f32 %v1824_v60 }
  0xfe   :  { %2164 = vtanh.f32 %v341_v61 }
 0x105   :  { %v2159_v62 = vpop.eup %2158 }
 0x106   :  { %v2161_v63 = vpop.eup %2160  ;;  %v351_v27 = vadd.f32 1.0, %v2159_v62 }
 0x107   :  { %v352_v31 = vadd.f32 1.0, %v2161_v63  ;;  %v2163_v36 = vpop.eup %2162 }
 0x108   :  { %2166 = vrcp.f32 %v351_v27  ;;  %v2165_v37 = vpop.eup %2164  ;;  %v353_v41 = vadd.f32 1.0, %v2163_v36  ;;  %v1827_v27 = vld [vmem:[%s3347_s2 + $0x18] sm:$0xff] }
 0x109   :  { %2168 = vrcp.f32 %v352_v31 }
 0x10a   :  { %2170 = vrcp.f32 %v353_v41 }
 0x112   :  { %v2167_v40 = vpop.eup %2166 }
 0x113   :  { %v2169_v42 = vpop.eup %2168  ;;  %v362_v43 = vmul.f32 %v2167_v40, %v2165_v37 }
 0x114   :  { %v361_v44 = vmul.f32 %v2169_v42, %v51_v39  ;;  %v2171_v48 = vpop.eup %2170  ;;  %v381_v42 = vunpack.c.l.bf16 %v1827_v27 }
 0x116   :  { %v363_v46 = vadd.f32 %v362_v43, %v361_v44  ;;  %v382_v43 = vunpack.c.h.bf16 %v1827_v27 }
 0x118   :  { %2172 = vtanh.f32 %v363_v46  ;;  %v2676_v47 = vsel %vm372_vm4, %v363_v46, %v51_v39 }
 0x122   :  { %v2173_v49 = vpop.eup %2172 }
 0x123   :  { %v365_v50 = vmul.f32 %v2173_v49, %v2171_v48 }
 0x125   :  { %v2679_v51 = vsel %vm372_vm4, %v365_v50, %v2598_v33  ;;  %v624_v33 = vsel %vm1837_vm5, 1, %v2338_v1 }
 0x126   :  { %v383_v52 = vpack.c.bf16 %v2679_v51, %v2679_v51  ;;  %626 = vperm.xlu1 %2061, %v624_v33  }
 0x128   :  { %417 = vmatmul.mubr.bf16.vlgmr.msra.gmra.mrb[4].mxu0 %v383_v52  ;;  %458 = vmatmul.mubr.bf16.vlgmr.msra.gmra.mrb[4].mxu1 %v383_v52 }
 0x129   :  { %513 = vmatpush1.bf16.msra.mxu0 %v2422_v2  ;;  %554 = vmatpush1.bf16.msra.mxu1 %v2452_v7 }
 0x12a   :  { %514 = vmatprep.subr.bf16.mxu0 %v2430_v3  ;;  %555 = vmatprep.subr.bf16.mxu1 %v2471_v10 }
 0x12b   :  { %544 = vmatprep.mubr.bf16.mxu0 %v2338_v1  ;;  %585 = vmatprep.mubr.bf16.mxu1 %v2338_v1 }
 0x12c   :  { %754 = vperm.xlu1 %2061, %v752_v53  }
 0x12d   :  { %515 = vmatpush1.bf16.msra.mxu0 %v2436_v4  ;;  %556 = vmatpush1.bf16.msra.mxu1 %v2476_v11 }
 0x12e   :  { %516 = vmatprep.subr.bf16.mxu0 %v2442_v5  ;;  %557 = vmatprep.subr.bf16.mxu1 %v2493_v14 }
 0x130   :  { %1010 = vperm.xlu1 %2061, %v1008_v54  }
 0x131   :  { %517 = vmatpush1.bf16.msra.mxu0 %v2458_v8  ;;  %558 = vmatpush1.bf16.msra.mxu1 %v2500_v15 }
 0x132   :  { %518 = vmatprep.subr.bf16.mxu0 %v2465_v9  ;;  %559 = vmatprep.subr.bf16.mxu1 %v2506_v16 }
 0x134   :  { %1266 = vperm.xlu1 %2061, %v1264_v55  }
 0x135   :  { %519 = vmatpush1.bf16.msra.mxu0 %v2483_v12  ;;  %560 = vmatpush1.bf16.msra.mxu1 %v2524_v19 }
 0x136   :  { %520 = vmatprep.subr.bf16.mxu0 %v2488_v13  ;;  %561 = vmatprep.subr.bf16.mxu1 %v2530_v20 }
 0x139   :  { %521 = vmatpush1.bf16.msra.mxu0 %v2512_v17  ;;  %562 = vmatpush1.bf16.msra.mxu1 %v2548_v23 }
 0x13a   :  { %522 = vmatprep.subr.bf16.mxu0 %v2518_v18  ;;  %563 = vmatprep.subr.bf16.mxu1 %v2554_v24 }
 0x13d   :  { %523 = vmatpush1.bf16.msra.mxu0 %v2535_v21  ;;  %564 = vmatpush1.bf16.msra.mxu1 %v2580_v29 }
 0x13e   :  { %524 = vmatprep.subr.bf16.mxu0 %v2541_v22  ;;  %565 = vmatprep.subr.bf16.mxu1 %v2586_v30 }
 0x141   :  { %525 = vmatpush1.bf16.msra.mxu0 %v2566_v26  ;;  %566 = vmatpush1.bf16.msra.mxu1 %v2606_v34 }
 0x142   :  { %526 = vmatprep.subr.bf16.mxu0 %v2574_v28  ;;  %567 = vmatprep.subr.bf16.mxu1 %v2612_v35 }
 0x145   :  { %527 = vmatpush1.bf16.msra.mxu0 %v2593_v32  ;;  %568 = vmatpush1.bf16.msra.mxu1 %v2623_v38 }
 0x146   :  { %640 = vmatprep.subr.bf16.mxu0 %v2415_v0  ;;  %681 = vmatprep.subr.bf16.mxu1 %v2447_v6 }
 0x1fb   :  { %v418_v59 = vpop.f32.mrb[4].mxu0  ;;  %v459_v60 = vpop.f32.mrb[4].mxu1 }
 0x1fc   :  { %v466_v61 = vadd.f32 %v418_v59, %v379_v57  ;;  %v420_v62 = vpop.f32.mrb[5].mxu0  ;;  %v461_v63 = vpop.f32.mrb[5].mxu1  ;;  %v468_v44 = vadd.f32 %v459_v60, %v381_v42 }
 0x1fd   :  { %v467_v25 = vadd.f32 %v420_v62, %v380_v58  ;;  %v422_v31 = vpop.f32.mrb[6].mxu0  ;;  %v463_v36 = vpop.f32.mrb[6].mxu1  ;;  %v469_v45 = vadd.f32 %v461_v63, %v382_v43  ;;  %v1833_v43 = vld [vmem:[%s3347_s2 + $0x28] sm:$0xff] }
 0x1fe   :  { %v1828_v37 = vmul.f32 -1.442695, %v466_v61  ;;  %v423_v39 = vpop.f32.mrb[7].mxu0  ;;  %v464_v40 = vpop.f32.mrb[7].mxu1  ;;  %v1830_v46 = vmul.f32 -1.442695, %v468_v44 }
 0x1ff   :  { %v1829_v41 = vmul.f32 -1.442695, %v467_v25  ;;  %v499_v59 = vpop.permute.xlu0 %498 }
 0x200   :  { %2174 = vpow2.f32 %v1828_v37  ;;  %vm500_vm9 = vcmp.eq.s32.totalorder %v499_v59, 1 }
 0x201   :  { %2176 = vpow2.f32 %v1829_v41 }
 0x202   :  { %2178 = vtanh.f32 %v469_v45 }
 0x203   :  { %2180 = vpow2.f32 %v1830_v46 }
 0x20a   :  { %v2175_v48 = vpop.eup %2174 }
 0x20b   :  { %v479_v49 = vadd.f32 1.0, %v2175_v48  ;;  %v2177_v50 = vpop.eup %2176 }
 0x20c   :  { %v480_v52 = vadd.f32 1.0, %v2177_v50  ;;  %v2179_v33 = vpop.eup %2178 }
 0x20d   :  { %2182 = vrcp.f32 %v479_v49  ;;  %v2181_v53 = vpop.eup %2180 }
 0x20e   :  { %2184 = vrcp.f32 %v480_v52  ;;  %v481_v57 = vadd.f32 1.0, %v2181_v53  ;;  %v510_v53 = vunpack.c.h.bf16 %v1833_v43 }
 0x210   :  { %2186 = vrcp.f32 %v481_v57 }
 0x217   :  { %v2183_v54 = vpop.eup %2182 }
 0x218   :  { %v490_v55 = vmul.f32 %v2183_v54, %v2179_v33  ;;  %v2185_v56 = vpop.eup %2184  ;;  %v509_v33 = vunpack.c.l.bf16 %v1833_v43 }
 0x219   :  { %v489_v58 = vmul.f32 %v2185_v56, %v2676_v47 }
 0x21a   :  { %v2187_v62 = vpop.eup %2186 }
 0x21b   :  { %v491_v60 = vadd.f32 %v490_v55, %v489_v58 }
 0x21d   :  { %2188 = vtanh.f32 %v491_v60  ;;  %v2733_v61 = vsel %vm500_vm9, %v491_v60, %v2676_v47  ;;  %v1832_v47 = vld [vmem:[%s3347_s2 + $0x20] sm:$0xff] }
 0x21e   :  { %v508_v36 = vunpack.c.h.bf16 %v1832_v47 }
 0x227   :  { %v2189_v63 = vpop.eup %2188 }
 0x228   :  { %v493_v27 = vmul.f32 %v2189_v63, %v2187_v62 }
 0x22a   :  { %v2736_v25 = vsel %vm500_vm9, %v493_v27, %v2679_v51  ;;  %v507_v51 = vunpack.c.l.bf16 %v1832_v47 }
 0x22b   :  { %v511_v31 = vpack.c.bf16 %v2736_v25, %v2736_v25 }
 0x22d   :  { %545 = vmatmul.mubr.bf16.vlgmr.msra.gmra.mrb[8].mxu0 %v511_v31  ;;  %586 = vmatmul.mubr.bf16.vlgmr.msra.gmra.mrb[8].mxu1 %v511_v31  ;;  %v627_v31 = vpop.permute.xlu1 %626 }
 0x22e   :  { %641 = vmatpush1.bf16.msra.mxu0 %v2422_v2  ;;  %682 = vmatpush1.bf16.msra.mxu1 %v2452_v7  ;;  %vm628_vm10 = vcmp.eq.s32.totalorder %v627_v31, 1 }
 0x22f   :  { %642 = vmatprep.subr.bf16.mxu0 %v2430_v3  ;;  %683 = vmatprep.subr.bf16.mxu1 %v2471_v10 }
 0x230   :  { %672 = vmatprep.mubr.bf16.mxu0 %v2338_v1  ;;  %713 = vmatprep.mubr.bf16.mxu1 %v2338_v1 }
 0x232   :  { %643 = vmatpush1.bf16.msra.mxu0 %v2436_v4  ;;  %684 = vmatpush1.bf16.msra.mxu1 %v2476_v11 }
 0x233   :  { %644 = vmatprep.subr.bf16.mxu0 %v2442_v5  ;;  %685 = vmatprep.subr.bf16.mxu1 %v2493_v14 }
 0x236   :  { %645 = vmatpush1.bf16.msra.mxu0 %v2458_v8  ;;  %686 = vmatpush1.bf16.msra.mxu1 %v2500_v15 }
 0x237   :  { %646 = vmatprep.subr.bf16.mxu0 %v2465_v9  ;;  %687 = vmatprep.subr.bf16.mxu1 %v2506_v16 }
 0x23a   :  { %647 = vmatpush1.bf16.msra.mxu0 %v2483_v12  ;;  %688 = vmatpush1.bf16.msra.mxu1 %v2524_v19 }
 0x23b   :  { %648 = vmatprep.subr.bf16.mxu0 %v2488_v13  ;;  %689 = vmatprep.subr.bf16.mxu1 %v2530_v20 }
 0x23e   :  { %649 = vmatpush1.bf16.msra.mxu0 %v2512_v17  ;;  %690 = vmatpush1.bf16.msra.mxu1 %v2548_v23 }
 0x23f   :  { %650 = vmatprep.subr.bf16.mxu0 %v2518_v18  ;;  %691 = vmatprep.subr.bf16.mxu1 %v2554_v24 }
 0x242   :  { %651 = vmatpush1.bf16.msra.mxu0 %v2535_v21  ;;  %692 = vmatpush1.bf16.msra.mxu1 %v2580_v29 }
 0x243   :  { %652 = vmatprep.subr.bf16.mxu0 %v2541_v22  ;;  %693 = vmatprep.subr.bf16.mxu1 %v2586_v30 }
 0x246   :  { %653 = vmatpush1.bf16.msra.mxu0 %v2566_v26  ;;  %694 = vmatpush1.bf16.msra.mxu1 %v2606_v34 }
 0x247   :  { %654 = vmatprep.subr.bf16.mxu0 %v2574_v28  ;;  %695 = vmatprep.subr.bf16.mxu1 %v2612_v35 }
 0x24a   :  { %655 = vmatpush1.bf16.msra.mxu0 %v2593_v32  ;;  %696 = vmatpush1.bf16.msra.mxu1 %v2623_v38 }
 0x24b   :  { %768 = vmatprep.subr.bf16.mxu0 %v2415_v0  ;;  %809 = vmatprep.subr.bf16.mxu1 %v2447_v6 }
 0x300   :  { %v546_v37 = vpop.f32.mrb[8].mxu0  ;;  %v587_v39 = vpop.f32.mrb[8].mxu1 }
 0x301   :  { %v594_v40 = vadd.f32 %v546_v37, %v507_v51  ;;  %v548_v41 = vpop.f32.mrb[9].mxu0  ;;  %v589_v42 = vpop.f32.mrb[9].mxu1  ;;  %v596_v54 = vadd.f32 %v587_v39, %v509_v33 }
 0x302   :  { %v595_v44 = vadd.f32 %v548_v41, %v508_v36  ;;  %v550_v45 = vpop.f32.mrb[10].mxu0  ;;  %v591_v46 = vpop.f32.mrb[10].mxu1  ;;  %v597_v55 = vadd.f32 %v589_v42, %v510_v53  ;;  %v1839_v53 = vld [vmem:[%s3347_s2 + $0x38] sm:$0xff] }
 0x303   :  { %v1834_v48 = vmul.f32 -1.442695, %v594_v40  ;;  %v551_v49 = vpop.f32.mrb[11].mxu0  ;;  %v592_v50 = vpop.f32.mrb[11].mxu1  ;;  %v1836_v56 = vmul.f32 -1.442695, %v596_v54 }
 0x304   :  { %v1835_v52 = vmul.f32 -1.442695, %v595_v44 }
 0x305   :  { %2190 = vpow2.f32 %v1834_v48 }
 0x306   :  { %2192 = vpow2.f32 %v1835_v52 }
 0x307   :  { %2194 = vtanh.f32 %v597_v55 }
 0x308   :  { %2196 = vpow2.f32 %v1836_v56 }
 0x30f   :  { %v2191_v57 = vpop.eup %2190 }
 0x310   :  { %v607_v58 = vadd.f32 1.0, %v2191_v57  ;;  %v2193_v59 = vpop.eup %2192 }
 0x311   :  { %v608_v60 = vadd.f32 1.0, %v2193_v59  ;;  %v2195_v62 = vpop.eup %2194 }
 0x312   :  { %2198 = vrcp.f32 %v607_v58  ;;  %v2197_v63 = vpop.eup %2196 }
 0x313   :  { %2200 = vrcp.f32 %v608_v60  ;;  %v609_v36 = vadd.f32 1.0, %v2197_v63  ;;  %v638_v63 = vunpack.c.h.bf16 %v1839_v53 }
 0x315   :  { %2202 = vrcp.f32 %v609_v36 }
 0x31c   :  { %v2199_v27 = vpop.eup %2198 }
 0x31d   :  { %v618_v47 = vmul.f32 %v2199_v27, %v2195_v62  ;;  %v2201_v51 = vpop.eup %2200  ;;  %v637_v62 = vunpack.c.l.bf16 %v1839_v53 }
 0x31e   :  { %v617_v37 = vmul.f32 %v2201_v51, %v2733_v61 }
 0x31f   :  { %v2203_v41 = vpop.eup %2202 }
 0x320   :  { %v619_v39 = vadd.f32 %v618_v47, %v617_v37 }
 0x322   :  { %2204 = vtanh.f32 %v619_v39  ;;  %v2782_v40 = vsel %vm628_vm10, %v619_v39, %v2733_v61  ;;  %v1838_v61 = vld [vmem:[%s3347_s2 + $0x30] sm:$0xff] }
 0x323   :  { %v636_v46 = vunpack.c.h.bf16 %v1838_v61 }
 0x32c   :  { %v2205_v42 = vpop.eup %2204 }
 0x32d   :  { %v621_v43 = vmul.f32 %v2205_v42, %v2203_v41 }
 0x32f   :  { %v2785_v44 = vsel %vm628_vm10, %v621_v43, %v2736_v25  ;;  %v635_v25 = vunpack.c.l.bf16 %v1838_v61 }
 0x330   :  { %v639_v45 = vpack.c.bf16 %v2785_v44, %v2785_v44 }
 0x332   :  { %673 = vmatmul.mubr.bf16.vlgmr.msra.gmra.mrb[12].mxu0 %v639_v45  ;;  %714 = vmatmul.mubr.bf16.vlgmr.msra.gmra.mrb[12].mxu1 %v639_v45 }
 0x333   :  { %769 = vmatpush1.bf16.msra.mxu0 %v2422_v2  ;;  %810 = vmatpush1.bf16.msra.mxu1 %v2452_v7 }
 0x334   :  { %770 = vmatprep.subr.bf16.mxu0 %v2430_v3  ;;  %811 = vmatprep.subr.bf16.mxu1 %v2471_v10 }
 0x335   :  { %800 = vmatprep.mubr.bf16.mxu0 %v2338_v1  ;;  %841 = vmatprep.mubr.bf16.mxu1 %v2338_v1 }
 0x337   :  { %771 = vmatpush1.bf16.msra.mxu0 %v2436_v4  ;;  %812 = vmatpush1.bf16.msra.mxu1 %v2476_v11 }
 0x338   :  { %772 = vmatprep.subr.bf16.mxu0 %v2442_v5  ;;  %813 = vmatprep.subr.bf16.mxu1 %v2493_v14 }
 0x33b   :  { %773 = vmatpush1.bf16.msra.mxu0 %v2458_v8  ;;  %814 = vmatpush1.bf16.msra.mxu1 %v2500_v15 }
 0x33c   :  { %774 = vmatprep.subr.bf16.mxu0 %v2465_v9  ;;  %815 = vmatprep.subr.bf16.mxu1 %v2506_v16 }
 0x33f   :  { %775 = vmatpush1.bf16.msra.mxu0 %v2483_v12  ;;  %816 = vmatpush1.bf16.msra.mxu1 %v2524_v19 }
 0x340   :  { %776 = vmatprep.subr.bf16.mxu0 %v2488_v13  ;;  %817 = vmatprep.subr.bf16.mxu1 %v2530_v20 }
 0x343   :  { %777 = vmatpush1.bf16.msra.mxu0 %v2512_v17  ;;  %818 = vmatpush1.bf16.msra.mxu1 %v2548_v23 }
 0x344   :  { %778 = vmatprep.subr.bf16.mxu0 %v2518_v18  ;;  %819 = vmatprep.subr.bf16.mxu1 %v2554_v24 }
 0x347   :  { %779 = vmatpush1.bf16.msra.mxu0 %v2535_v21  ;;  %820 = vmatpush1.bf16.msra.mxu1 %v2580_v29 }
 0x348   :  { %780 = vmatprep.subr.bf16.mxu0 %v2541_v22  ;;  %821 = vmatprep.subr.bf16.mxu1 %v2586_v30 }
 0x34b   :  { %781 = vmatpush1.bf16.msra.mxu0 %v2566_v26  ;;  %822 = vmatpush1.bf16.msra.mxu1 %v2606_v34 }
 0x34c   :  { %782 = vmatprep.subr.bf16.mxu0 %v2574_v28  ;;  %823 = vmatprep.subr.bf16.mxu1 %v2612_v35 }
 0x34f   :  { %783 = vmatpush1.bf16.msra.mxu0 %v2593_v32  ;;  %824 = vmatpush1.bf16.msra.mxu1 %v2623_v38 }
 0x350   :  { %896 = vmatprep.subr.bf16.mxu0 %v2415_v0  ;;  %937 = vmatprep.subr.bf16.mxu1 %v2447_v6 }
 0x405   :  { %v674_v48 = vpop.f32.mrb[12].mxu0  ;;  %v715_v49 = vpop.f32.mrb[12].mxu1 }
 0x406   :  { %v722_v50 = vadd.f32 %v674_v48, %v635_v25  ;;  %v676_v52 = vpop.f32.mrb[13].mxu0  ;;  %v717_v33 = vpop.f32.mrb[13].mxu1  ;;  %v724_v27 = vadd.f32 %v715_v49, %v637_v62 }
 0x407   :  { %v723_v54 = vadd.f32 %v676_v52, %v636_v46  ;;  %v678_v55 = vpop.f32.mrb[14].mxu0  ;;  %v719_v56 = vpop.f32.mrb[14].mxu1  ;;  %v725_v31 = vadd.f32 %v717_v33, %v638_v63 }
 0x408   :  { %v1840_v57 = vmul.f32 -1.442695, %v722_v50  ;;  %v679_v58 = vpop.f32.mrb[15].mxu0  ;;  %v720_v59 = vpop.f32.mrb[15].mxu1  ;;  %v1842_v47 = vmul.f32 -1.442695, %v724_v27 }
 0x409   :  { %v1841_v60 = vmul.f32 -1.442695, %v723_v54  ;;  %v755_v48 = vpop.permute.xlu1 %754 }
 0x40a   :  { %2206 = vpow2.f32 %v1840_v57  ;;  %vm756_vm11 = vcmp.eq.s32.totalorder %v755_v48, 1  ;;  %v2922_v48 = vld [vmem:[%s3343_s4 + $0x28] ss:$16 sps:$4 sm:$0xff]  }
 0x40b   :  { %2208 = vpow2.f32 %v1841_v60 }
 0x40c   :  { %2210 = vtanh.f32 %v725_v31  ;;  %v883_v31 = vpop.permute.xlu0 %882 }
 0x40d   :  { %2212 = vpow2.f32 %v1842_v47  ;;  %vm884_vm12 = vcmp.eq.s32.totalorder %v883_v31, 1 }
 0x414   :  { %v2207_v51 = vpop.eup %2206 }
 0x415   :  { %v735_v36 = vadd.f32 1.0, %v2207_v51  ;;  %v2209_v37 = vpop.eup %2208 }
 0x416   :  { %v736_v39 = vadd.f32 1.0, %v2209_v37  ;;  %v2211_v41 = vpop.eup %2210 }
 0x417   :  { %2214 = vrcp.f32 %v735_v36  ;;  %v2213_v42 = vpop.eup %2212 }
 0x418   :  { %2216 = vrcp.f32 %v736_v39  ;;  %v737_v25 = vadd.f32 1.0, %v2213_v42 }
 0x41a   :  { %2218 = vrcp.f32 %v737_v25  ;;  %v2908_v25 = vld [vmem:[%s3343_s4 + $0x2c] ss:$16 sps:$4 sm:$0xff]  }
 0x421   :  { %v2215_v43 = vpop.eup %2214 }
 0x422   :  { %v746_v45 = vmul.f32 %v2215_v43, %v2211_v41  ;;  %v2217_v61 = vpop.eup %2216  ;;  %v2890_v43 = vld [vmem:[%s3343_s4] ss:$16 sps:$4 sm:$0xff]  }
 0x423   :  { %v745_v46 = vmul.f32 %v2217_v61, %v2782_v40  ;;  %v2902_v61 = vld [vmem:[%s3343_s4 + $0x24] ss:$16 sps:$4 sm:$0xff]  }
 0x424   :  { %v2219_v52 = vpop.eup %2218 }
 0x425   :  { %v747_v49 = vadd.f32 %v746_v45, %v745_v46  ;;  %v2896_v45 = vld [vmem:[%s3343_s4 + $0x8] ss:$16 sps:$4 sm:$0xff]   ;;  %v2916_v46 = vld [vmem:[%s3343_s4 + $0x20] ss:$16 sps:$4 sm:$0xff]  }
 0x427   :  { %2220 = vtanh.f32 %v747_v49  ;;  %v2831_v50 = vsel %vm756_vm11, %v747_v49, %v2782_v40  ;;  %v2928_v49 = vld [vmem:[%s3343_s4 + $0x44] ss:$16 sps:$4 sm:$0xff]  }
 0x431   :  { %v2221_v33 = vpop.eup %2220 }
 0x432   :  { %v749_v53 = vmul.f32 %v2221_v33, %v2219_v52  ;;  %v2940_v52 = vld [vmem:[%s3343_s4 + $0x40] ss:$16 sps:$4 sm:$0xff]   ;;  %v2946_v33 = vld [vmem:[%s3343_s4 + $0x48] ss:$16 sps:$4 sm:$0xff]  }
 0x434   :  { %v2834_v54 = vsel %vm756_vm11, %v749_v53, %v2785_v44  ;;  %v2952_v53 = vld [vmem:[%s3343_s4 + $0x64] ss:$16 sps:$4 sm:$0xff]  }
 0x435   :  { %v767_v55 = vpack.c.bf16 %v2834_v54, %v2834_v54 }
 0x437   :  { %801 = vmatmul.mubr.bf16.vlgmr.msra.gmra.mrb[16].mxu0 %v767_v55  ;;  %842 = vmatmul.mubr.bf16.vlgmr.msra.gmra.mrb[16].mxu1 %v767_v55  ;;  %v2964_v55 = vld [vmem:[%s3343_s4 + $0x60] ss:$16 sps:$4 sm:$0xff]  }
 0x438   :  { %897 = vmatpush1.bf16.msra.mxu0 %v2422_v2  ;;  %938 = vmatpush1.bf16.msra.mxu1 %v2452_v7  ;;  %v1844_v2 = vld [vmem:[%s3347_s2 + $0x40] sm:$0xff] }
 0x439   :  { %898 = vmatprep.subr.bf16.mxu0 %v2430_v3  ;;  %939 = vmatprep.subr.bf16.mxu1 %v2471_v10  ;;  %v763_v3 = vunpack.c.l.bf16 %v1844_v2 }
 0x43a   :  { %928 = vmatprep.mubr.bf16.mxu0 %v2338_v1  ;;  %969 = vmatprep.mubr.bf16.mxu1 %v2338_v1 }
 0x43c   :  { %899 = vmatpush1.bf16.msra.mxu0 %v2436_v4  ;;  %940 = vmatpush1.bf16.msra.mxu1 %v2476_v11  ;;  %v764_v4 = vunpack.c.h.bf16 %v1844_v2  ;;  %v1845_v11 = vld [vmem:[%s3347_s2 + $0x48] sm:$0xff] }
 0x43d   :  { %900 = vmatprep.subr.bf16.mxu0 %v2442_v5  ;;  %941 = vmatprep.subr.bf16.mxu1 %v2493_v14  ;;  %v2970_v2 = vld [vmem:[%s3343_s4 + $0x68] ss:$16 sps:$4 sm:$0xff]  }
 0x440   :  { %901 = vmatpush1.bf16.msra.mxu0 %v2458_v8  ;;  %942 = vmatpush1.bf16.msra.mxu1 %v2500_v15 }
 0x441   :  { %902 = vmatprep.subr.bf16.mxu0 %v2465_v9  ;;  %943 = vmatprep.subr.bf16.mxu1 %v2506_v16 }
 0x444   :  { %903 = vmatpush1.bf16.msra.mxu0 %v2483_v12  ;;  %944 = vmatpush1.bf16.msra.mxu1 %v2524_v19 }
 0x445   :  { %904 = vmatprep.subr.bf16.mxu0 %v2488_v13  ;;  %945 = vmatprep.subr.bf16.mxu1 %v2530_v20 }
 0x448   :  { %905 = vmatpush1.bf16.msra.mxu0 %v2512_v17  ;;  %946 = vmatpush1.bf16.msra.mxu1 %v2548_v23  ;;  %v765_v17 = vunpack.c.l.bf16 %v1845_v11 }
 0x449   :  { %906 = vmatprep.subr.bf16.mxu0 %v2518_v18  ;;  %947 = vmatprep.subr.bf16.mxu1 %v2554_v24  ;;  %v766_v18 = vunpack.c.h.bf16 %v1845_v11 }
 0x44c   :  { %907 = vmatpush1.bf16.msra.mxu0 %v2535_v21  ;;  %948 = vmatpush1.bf16.msra.mxu1 %v2580_v29 }
 0x44d   :  { %908 = vmatprep.subr.bf16.mxu0 %v2541_v22  ;;  %949 = vmatprep.subr.bf16.mxu1 %v2586_v30 }
 0x450   :  { %909 = vmatpush1.bf16.msra.mxu0 %v2566_v26  ;;  %950 = vmatpush1.bf16.msra.mxu1 %v2606_v34 }
 0x451   :  { %910 = vmatprep.subr.bf16.mxu0 %v2574_v28  ;;  %951 = vmatprep.subr.bf16.mxu1 %v2612_v35 }
 0x454   :  { %911 = vmatpush1.bf16.msra.mxu0 %v2593_v32  ;;  %952 = vmatpush1.bf16.msra.mxu1 %v2623_v38 }
 0x455   :  { %1024 = vmatprep.subr.bf16.mxu0 %v2415_v0  ;;  %1065 = vmatprep.subr.bf16.mxu1 %v2447_v6 }
 0x50a   :  { %v802_v5 = vpop.f32.mrb[16].mxu0  ;;  %v843_v7 = vpop.f32.mrb[16].mxu1 }
 0x50b   :  { %v850_v8 = vadd.f32 %v802_v5, %v763_v3  ;;  %v804_v9 = vpop.f32.mrb[17].mxu0  ;;  %v845_v10 = vpop.f32.mrb[17].mxu1  ;;  %v852_v19 = vadd.f32 %v843_v7, %v765_v17  ;;  %v2976_v3 = vld [vmem:[%s3343_s4 + $0x84] ss:$16 sps:$4 sm:$0xff]   ;;  %v2988_v5 = vld [vmem:[%s3343_s4 + $0x80] ss:$16 sps:$4 sm:$0xff]  }
 0x50c   :  { %v851_v12 = vadd.f32 %v804_v9, %v764_v4  ;;  %v806_v13 = vpop.f32.mrb[18].mxu0  ;;  %v847_v0 = vpop.f32.mrb[18].mxu1  ;;  %v853_v20 = vadd.f32 %v845_v10, %v766_v18  ;;  %v2982_v4 = vld [vmem:[%s3343_s4 + $0x8c] ss:$16 sps:$4 sm:$0xff]   ;;  %v2995_v7 = vld [vmem:[%s3343_s4 + $0xa4] ss:$16 sps:$4 sm:$0xff]  }
 0x50d   :  { %v1846_v14 = vmul.f32 -1.442695, %v850_v8  ;;  %v807_v6 = vpop.f32.mrb[19].mxu0  ;;  %v848_v15 = vpop.f32.mrb[19].mxu1  ;;  %v1848_v21 = vmul.f32 -1.442695, %v852_v19 }
 0x50e   :  { %v1847_v16 = vmul.f32 -1.442695, %v851_v12  ;;  %v3002_v8 = vld [vmem:[%s3343_s4 + $0xa0] ss:$16 sps:$4 sm:$0xff]   ;;  %v1851_v10 = vld [vmem:[%s3347_s2 + $0x58] sm:$0xff] }
 0x50f   :  { %2222 = vpow2.f32 %v1846_v14  ;;  %v894_v17 = vunpack.c.h.bf16 %v1851_v10 }
 0x510   :  { %2224 = vpow2.f32 %v1847_v16  ;;  %v893_v16 = vunpack.c.l.bf16 %v1851_v10 }
 0x511   :  { %2226 = vtanh.f32 %v853_v20 }
 0x512   :  { %2228 = vpow2.f32 %v1848_v21 }
 0x519   :  { %v2223_v22 = vpop.eup %2222 }
 0x51a   :  { %v863_v40 = vadd.f32 1.0, %v2223_v22  ;;  %v2225_v44 = vpop.eup %2224 }
 0x51b   :  { %v864_v56 = vadd.f32 1.0, %v2225_v44  ;;  %v2227_v57 = vpop.eup %2226 }
 0x51c   :  { %2230 = vrcp.f32 %v863_v40  ;;  %v2229_v58 = vpop.eup %2228 }
 0x51d   :  { %2232 = vrcp.f32 %v864_v56  ;;  %v865_v63 = vadd.f32 1.0, %v2229_v58 }
 0x51f   :  { %2234 = vrcp.f32 %v865_v63 }
 0x526   :  { %v2231_v59 = vpop.eup %2230 }
 0x527   :  { %v874_v60 = vmul.f32 %v2231_v59, %v2227_v57  ;;  %v2233_v62 = vpop.eup %2232 }
 0x528   :  { %v873_v27 = vmul.f32 %v2233_v62, %v2831_v50 }
 0x529   :  { %v2235_v36 = vpop.eup %2234 }
 0x52a   :  { %v875_v47 = vadd.f32 %v874_v60, %v873_v27  ;;  %v1011_v27 = vpop.permute.xlu1 %1010 }
 0x52b   :  { %vm1012_vm13 = vcmp.eq.s32.totalorder %v1011_v27, 1  ;;  %v2130_v27 = vld [vmem:[%s3349_s5 + $0x2c] ss:$16 sps:$4 sm:$0xff]  }
 0x52c   :  { %2236 = vtanh.f32 %v875_v47  ;;  %v2880_v51 = vsel %vm884_vm12, %v875_v47, %v2831_v50  ;;  %v2934_v50 = vld [vmem:[%s3343_s4 + $0x4c] ss:$16 sps:$4 sm:$0xff]  }
 0x536   :  { %v2237_v37 = vpop.eup %2236 }
 0x537   :  { %v877_v39 = vmul.f32 %v2237_v37, %v2235_v36 }
 0x539   :  { %v2883_v41 = vsel %vm884_vm12, %v877_v39, %v2834_v54  ;;  %v2958_v54 = vld [vmem:[%s3343_s4 + $0x6c] ss:$16 sps:$4 sm:$0xff]  }
 0x53a   :  { %v895_v42 = vpack.c.bf16 %v2883_v41, %v2883_v41 }
 0x53c   :  { %929 = vmatmul.mubr.bf16.vlgmr.msra.gmra.mrb[20].mxu0 %v895_v42  ;;  %970 = vmatmul.mubr.bf16.vlgmr.msra.gmra.mrb[20].mxu1 %v895_v42 }
 0x53d   :  { %1025 = vmatpush1.bf16.msra.mxu0 %v2890_v43  ;;  %1066 = vmatpush1.bf16.msra.mxu1 %v2896_v45 }
 0x53e   :  { %1026 = vmatprep.subr.bf16.mxu0 %v2902_v61  ;;  %1067 = vmatprep.subr.bf16.mxu1 %v2908_v25 }
 0x53f   :  { %1056 = vmatprep.mubr.bf16.mxu0 %v2338_v1  ;;  %1097 = vmatprep.mubr.bf16.mxu1 %v2338_v1 }
 0x541   :  { %1027 = vmatpush1.bf16.msra.mxu0 %v2916_v46  ;;  %1068 = vmatpush1.bf16.msra.mxu1 %v2922_v48 }
 0x542   :  { %1028 = vmatprep.subr.bf16.mxu0 %v2928_v49  ;;  %1069 = vmatprep.subr.bf16.mxu1 %v2934_v50 }
 0x545   :  { %1029 = vmatpush1.bf16.msra.mxu0 %v2940_v52  ;;  %1070 = vmatpush1.bf16.msra.mxu1 %v2946_v33 }
 0x546   :  { %1030 = vmatprep.subr.bf16.mxu0 %v2952_v53  ;;  %1071 = vmatprep.subr.bf16.mxu1 %v2958_v54 }
 0x549   :  { %1031 = vmatpush1.bf16.msra.mxu0 %v2964_v55  ;;  %1072 = vmatpush1.bf16.msra.mxu1 %v2970_v2 }
 0x54a   :  { %1032 = vmatprep.subr.bf16.mxu0 %v2976_v3  ;;  %1073 = vmatprep.subr.bf16.mxu1 %v2982_v4 }
 0x54d   :  { %1033 = vmatpush1.bf16.msra.mxu0 %v2988_v5  ;;  %1074 = vmatpush1.bf16.msra.mxu1 %v2548_v23  ;;  %v3009_v23 = vld [vmem:[%s3343_s4 + $0xc4] ss:$16 sps:$4 sm:$0xff]  }
 0x54e   :  { %1034 = vmatprep.subr.bf16.mxu0 %v2995_v7  ;;  %1075 = vmatprep.subr.bf16.mxu1 %v2554_v24  ;;  %v2326_v24 = vld [vmem:[%s3343_s4 + $0x4] ss:$16 sps:$4 sm:$0xff]  }
 0x551   :  { %1035 = vmatpush1.bf16.msra.mxu0 %v3002_v8  ;;  %1076 = vmatpush1.bf16.msra.mxu1 %v2580_v29  ;;  %v2327_v29 = vld [vmem:[%s3343_s4 + $0xc] ss:$16 sps:$4 sm:$0xff]  }
 0x552   :  { %1036 = vmatprep.subr.bf16.mxu0 %v3009_v23  ;;  %1077 = vmatprep.subr.bf16.mxu1 %v2586_v30 }
 0x555   :  { %1037 = vmatpush1.bf16.msra.mxu0 %v2566_v26  ;;  %1078 = vmatpush1.bf16.msra.mxu1 %v2606_v34  ;;  %v1850_v26 = vld [vmem:[%s3347_s2 + $0x50] sm:$0xff] }
 0x556   :  { %1038 = vmatprep.subr.bf16.mxu0 %v2574_v28  ;;  %1079 = vmatprep.subr.bf16.mxu1 %v2612_v35  ;;  %v891_v28 = vunpack.c.l.bf16 %v1850_v26  ;;  %v892_v30 = vunpack.c.h.bf16 %v1850_v26 }
 0x559   :  { %1039 = vmatpush1.bf16.msra.mxu0 %v2593_v32  ;;  %1080 = vmatpush1.bf16.msra.mxu1 %v2623_v38 }
 0x55a   :  { %1152 = vmatprep.subr.bf16.mxu0 %v2326_v24  ;;  %1193 = vmatprep.subr.bf16.mxu1 %v2327_v29 }
 0x60f   :  { %v930_v34 = vpop.f32.mrb[20].mxu0  ;;  %v971_v32 = vpop.f32.mrb[20].mxu1 }
 0x610   :  { %v978_v35 = vadd.f32 %v930_v34, %v891_v28  ;;  %v932_v38 = vpop.f32.mrb[21].mxu0  ;;  %v973_v9 = vpop.f32.mrb[21].mxu1  ;;  %v980_v18 = vadd.f32 %v971_v32, %v893_v16 }
 0x611   :  { %v979_v11 = vadd.f32 %v932_v38, %v892_v30  ;;  %v934_v12 = vpop.f32.mrb[22].mxu0  ;;  %v975_v13 = vpop.f32.mrb[22].mxu1  ;;  %v981_v19 = vadd.f32 %v973_v9, %v894_v17 }
 0x612   :  { %v1852_v0 = vmul.f32 -1.442695, %v978_v35  ;;  %v935_v14 = vpop.f32.mrb[23].mxu0  ;;  %v976_v6 = vpop.f32.mrb[23].mxu1  ;;  %v1854_v20 = vmul.f32 -1.442695, %v980_v18 }
 0x613   :  { %v1853_v15 = vmul.f32 -1.442695, %v979_v11 }
 0x614   :  { %2238 = vpow2.f32 %v1852_v0 }
 0x615   :  { %2240 = vpow2.f32 %v1853_v15 }
 0x616   :  { %2242 = vtanh.f32 %v981_v19 }
 0x617   :  { %2244 = vpow2.f32 %v1854_v20 }
 0x61e   :  { %v2239_v21 = vpop.eup %2238 }
 0x61f   :  { %v991_v22 = vadd.f32 1.0, %v2239_v21  ;;  %v2241_v40 = vpop.eup %2240  ;;  %v1139_v21 = vpop.permute.xlu0 %1138 }
 0x620   :  { %v992_v44 = vadd.f32 1.0, %v2241_v40  ;;  %v2243_v56 = vpop.eup %2242  ;;  %vm1140_vm14 = vcmp.eq.s32.totalorder %v1139_v21, 1 }
 0x621   :  { %2246 = vrcp.f32 %v991_v22  ;;  %v2245_v57 = vpop.eup %2244 }
 0x622   :  { %2248 = vrcp.f32 %v992_v44  ;;  %v993_v62 = vadd.f32 1.0, %v2245_v57 }
 0x624   :  { %2250 = vrcp.f32 %v993_v62 }
 0x62b   :  { %v2247_v58 = vpop.eup %2246 }
 0x62c   :  { %v1002_v59 = vmul.f32 %v2247_v58, %v2243_v56  ;;  %v2249_v60 = vpop.eup %2248  ;;  %v2110_v58 = vld [vmem:[%s3349_s5] ss:$16 sps:$4 sm:$0xff]  }
 0x62d   :  { %v1001_v63 = vmul.f32 %v2249_v60, %v2880_v51  ;;  %v2122_v60 = vld [vmem:[%s3349_s5 + $0x8] ss:$16 sps:$4 sm:$0xff]  }
 0x62e   :  { %v2251_v36 = vpop.eup %2250 }
 0x62f   :  { %v1003_v31 = vadd.f32 %v1002_v59, %v1001_v63  ;;  %v2115_v63 = vld [vmem:[%s3349_s5 + $0x24] ss:$16 sps:$4 sm:$0xff]  }
 0x631   :  { %2252 = vtanh.f32 %v1003_v31  ;;  %v3033_v47 = vsel %vm1012_vm13, %v1003_v31, %v2880_v51  ;;  %v2328_v51 = vld [vmem:[%s3343_s4 + $0x88] ss:$16 sps:$4 sm:$0xff]   ;;  %v2113_v31 = vld [vmem:[%s3349_s5 + $0x20] ss:$16 sps:$4 sm:$0xff]  }
 0x63b   :  { %v2253_v37 = vpop.eup %2252 }
 0x63c   :  { %v1005_v39 = vmul.f32 %v2253_v37, %v2251_v36  ;;  %v2118_v36 = vld [vmem:[%s3349_s5 + $0x44] ss:$16 sps:$4 sm:$0xff]   ;;  %v2136_v37 = vld [vmem:[%s3349_s5 + $0x4c] ss:$16 sps:$4 sm:$0xff]  }
 0x63e   :  { %v3036_v42 = vsel %vm1012_vm13, %v1005_v39, %v2883_v41  ;;  %v2329_v41 = vld [vmem:[%s3343_s4 + $0xac] ss:$16 sps:$4 sm:$0xff]   ;;  %v2116_v39 = vld [vmem:[%s3349_s5 + $0x40] ss:$16 sps:$4 sm:$0xff]  }
 0x63f   :  { %v1023_v24 = vpack.c.bf16 %v3036_v42, %v3036_v42 }
 0x641   :  { %1057 = vmatmul.mubr.bf16.vlgmr.msra.gmra.mrb[24].mxu0 %v1023_v24  ;;  %1098 = vmatmul.mubr.bf16.vlgmr.msra.gmra.mrb[24].mxu1 %v1023_v24  ;;  %v2121_v24 = vld [vmem:[%s3349_s5 + $0x64] ss:$16 sps:$4 sm:$0xff]  }
 0x642   :  { %1153 = vmatpush1.bf16.msra.mxu0 %v2890_v43  ;;  %1194 = vmatpush1.bf16.msra.mxu1 %v2896_v45  ;;  %v2330_v43 = vld [vmem:[%s3343_s4 + $0xa8] ss:$16 sps:$4 sm:$0xff]   ;;  %v2331_v45 = vld [vmem:[%s3343_s4 + $0xcc] ss:$16 sps:$4 sm:$0xff]  }
 0x643   :  { %1154 = vmatprep.subr.bf16.mxu0 %v2902_v61  ;;  %1195 = vmatprep.subr.bf16.mxu1 %v2908_v25  ;;  %v2332_v61 = vld [vmem:[%s3343_s4 + $0xc0] ss:$16 sps:$4 sm:$0xff]   ;;  %v2333_v25 = vld [vmem:[%s3343_s4 + $0xc8] ss:$16 sps:$4 sm:$0xff]  }
 0x644   :  { %1184 = vmatprep.mubr.bf16.mxu0 %v2338_v1  ;;  %1225 = vmatprep.mubr.bf16.mxu1 %v2338_v1 }
 0x646   :  { %1155 = vmatpush1.bf16.msra.mxu0 %v2916_v46  ;;  %1196 = vmatpush1.bf16.msra.mxu1 %v2922_v48  ;;  %v2334_v46 = vld [vmem:[%s3343_s4 + $0xe4] ss:$16 sps:$4 sm:$0xff]   ;;  %v2335_v48 = vld [vmem:[%s3343_s4 + $0xec] ss:$16 sps:$4 sm:$0xff]  }
 0x647   :  { %1156 = vmatprep.subr.bf16.mxu0 %v2928_v49  ;;  %1197 = vmatprep.subr.bf16.mxu1 %v2934_v50  ;;  %v2336_v49 = vld [vmem:[%s3343_s4 + $0xe0] ss:$16 sps:$4 sm:$0xff]   ;;  %v2337_v50 = vld [vmem:[%s3343_s4 + $0xe8] ss:$16 sps:$4 sm:$0xff]  }
 0x64a   :  { %1157 = vmatpush1.bf16.msra.mxu0 %v2940_v52  ;;  %1198 = vmatpush1.bf16.msra.mxu1 %v2946_v33  ;;  %v2112_v52 = vld [vmem:[%s3349_s5 + $0x4] ss:$16 sps:$4 sm:$0xff]   ;;  %v2124_v33 = vld [vmem:[%s3349_s5 + $0xc] ss:$16 sps:$4 sm:$0xff]  }
 0x64b   :  { %1158 = vmatprep.subr.bf16.mxu0 %v2952_v53  ;;  %1199 = vmatprep.subr.bf16.mxu1 %v2958_v54  ;;  %v1856_v53 = vld [vmem:[%s3347_s2 + $0x60] sm:$0xff] }
 0x64c   :  { %v1019_v54 = vunpack.c.l.bf16 %v1856_v53 }
 0x64e   :  { %1159 = vmatpush1.bf16.msra.mxu0 %v2964_v55  ;;  %1200 = vmatpush1.bf16.msra.mxu1 %v2970_v2  ;;  %v1020_v55 = vunpack.c.h.bf16 %v1856_v53  ;;  %v2137_v53 = vld [vmem:[%s3349_s5 + $0xc0] ss:$16 sps:$4 sm:$0xff]  }
 0x64f   :  { %1160 = vmatprep.subr.bf16.mxu0 %v2976_v3  ;;  %1201 = vmatprep.subr.bf16.mxu1 %v2982_v4 }
 0x652   :  { %1161 = vmatpush1.bf16.msra.mxu0 %v2988_v5  ;;  %1202 = vmatpush1.bf16.msra.mxu1 %v2328_v51  ;;  %v2119_v51 = vld [vmem:[%s3349_s5 + $0x60] ss:$16 sps:$4 sm:$0xff]  }
 0x653   :  { %1162 = vmatprep.subr.bf16.mxu0 %v2995_v7  ;;  %1203 = vmatprep.subr.bf16.mxu1 %v2329_v41  ;;  %v2140_v41 = vld [vmem:[%s3349_s5 + $0x68] ss:$16 sps:$4 sm:$0xff]  }
 0x656   :  { %1163 = vmatpush1.bf16.msra.mxu0 %v3002_v8  ;;  %1204 = vmatpush1.bf16.msra.mxu1 %v2330_v43  ;;  %v1857_v8 = vld [vmem:[%s3347_s2 + $0x68] sm:$0xff]  ;;  %v2127_v43 = vld [vmem:[%s3349_s5 + $0x84] ss:$16 sps:$4 sm:$0xff]  }
 0x657   :  { %1164 = vmatprep.subr.bf16.mxu0 %v3009_v23  ;;  %1205 = vmatprep.subr.bf16.mxu1 %v2331_v45  ;;  %v1021_v35 = vunpack.c.l.bf16 %v1857_v8  ;;  %v1022_v38 = vunpack.c.h.bf16 %v1857_v8  ;;  %v2148_v45 = vld [vmem:[%s3349_s5 + $0x8c] ss:$16 sps:$4 sm:$0xff]   ;;  %v1596_v8 = vld [vmem:[%s3351_s10] sm:$0xff] }
 0x65a   :  { %1165 = vmatpush1.bf16.msra.mxu0 %v2332_v61  ;;  %1206 = vmatpush1.bf16.msra.mxu1 %v2333_v25  ;;  %v2125_v61 = vld [vmem:[%s3349_s5 + $0x80] ss:$16 sps:$4 sm:$0xff]   ;;  %v2146_v25 = vld [vmem:[%s3349_s5 + $0x88] ss:$16 sps:$4 sm:$0xff]  }
 0x65b   :  { %1166 = vmatprep.subr.bf16.mxu0 %v2334_v46  ;;  %1207 = vmatprep.subr.bf16.mxu1 %v2335_v48  ;;  %v2133_v46 = vld [vmem:[%s3349_s5 + $0xa4] ss:$16 sps:$4 sm:$0xff]   ;;  %v2151_v48 = vld [vmem:[%s3349_s5 + $0xac] ss:$16 sps:$4 sm:$0xff]  }
 0x65e   :  { %1167 = vmatpush1.bf16.msra.mxu0 %v2336_v49  ;;  %1208 = vmatpush1.bf16.msra.mxu1 %v2337_v50  ;;  %v2131_v49 = vld [vmem:[%s3349_s5 + $0xa0] ss:$16 sps:$4 sm:$0xff]   ;;  %v2149_v50 = vld [vmem:[%s3349_s5 + $0xa8] ss:$16 sps:$4 sm:$0xff]  }
 0x65f   :  { %1485 = vmatprep.subr.bf16.mxu0 %v2112_v52  ;;  %1526 = vmatprep.subr.bf16.mxu1 %v2124_v33  ;;  %v2139_v52 = vld [vmem:[%s3349_s5 + $0xc4] ss:$16 sps:$4 sm:$0xff]   ;;  %v2154_v33 = vld [vmem:[%s3349_s5 + $0xcc] ss:$16 sps:$4 sm:$0xff]  }
 0x714   :  { %v1058_v2 = vpop.f32.mrb[24].mxu0  ;;  %v1099_v3 = vpop.f32.mrb[24].mxu1 }
 0x715   :  { %v1106_v4 = vadd.f32 %v1058_v2, %v1019_v54  ;;  %v1060_v5 = vpop.f32.mrb[25].mxu0  ;;  %v1101_v7 = vpop.f32.mrb[25].mxu1  ;;  %v1108_v9 = vadd.f32 %v1099_v3, %v1021_v35  ;;  %v2152_v54 = vld [vmem:[%s3349_s5 + $0xc8] ss:$16 sps:$4 sm:$0xff]   ;;  %v2157_v2 = vld [vmem:[%s3349_s5 + $0xec] ss:$16 sps:$4 sm:$0xff]  }
 0x716   :  { %v1107_v23 = vadd.f32 %v1060_v5, %v1020_v55  ;;  %v1062_v29 = vpop.f32.mrb[26].mxu0  ;;  %v1103_v26 = vpop.f32.mrb[26].mxu1  ;;  %v1109_v10 = vadd.f32 %v1101_v7, %v1022_v38  ;;  %v2145_v55 = vld [vmem:[%s3349_s5 + $0xe4] ss:$16 sps:$4 sm:$0xff]   ;;  %v2143_v3 = vld [vmem:[%s3349_s5 + $0xe0] ss:$16 sps:$4 sm:$0xff]  }
 0x717   :  { %v1858_v28 = vmul.f32 -1.442695, %v1106_v4  ;;  %v1063_v30 = vpop.f32.mrb[27].mxu0  ;;  %v1104_v34 = vpop.f32.mrb[27].mxu1  ;;  %v1860_v11 = vmul.f32 -1.442695, %v1108_v9 }
 0x718   :  { %v1859_v32 = vmul.f32 -1.442695, %v1107_v23  ;;  %v1286_v4 = vld [vmem:[%s3350_s8] sm:$0xff]  ;;  %v2155_v5 = vld [vmem:[%s3349_s5 + $0xe8] ss:$16 sps:$4 sm:$0xff]   ;;  %v2339_v26 = vmov 0.0|0.0  }
 0x719   :  { %2254 = vpow2.f32 %v1858_v28  ;;  %v1324_v7 = vpack.c.bf16 %v1286_v4, %v1286_v4  ;;  %v1597_v23 = vld [vmem:[%s3351_s10 + $0x8] sm:$0xff]  ;;  %v1598_v28 = vld [vmem:[%s3351_s10 + $0x10] sm:$0xff]  ;;  %v1599_v30 = vld [vmem:[%s3351_s10 + $0x18] sm:$0xff] }
 0x71a   :  { %2256 = vpow2.f32 %v1859_v32  ;;  %v2033_v29 = vpack.c.bf16 %v1597_v23, %v1596_v8  ;;  %v2036_v34 = vpack.c.bf16 %v1599_v30, %v1598_v28  ;;  %v1600_v32 = vld [vmem:[%s3351_s10 + $0x20] sm:$0xff]  ;;  %v1601_v35 = vld [vmem:[%s3351_s10 + $0x28] sm:$0xff]  ;;  %v1602_v9 = vld [vmem:[%s3351_s10 + $0x30] sm:$0xff] }
 0x71b   :  { %2258 = vtanh.f32 %v1109_v10  ;;  %v2039_v38 = vpack.c.bf16 %v1601_v35, %v1600_v32  ;;  %v1603_v10 = vld [vmem:[%s3351_s10 + $0x38] sm:$0xff] }
 0x71c   :  { %2260 = vpow2.f32 %v1860_v11  ;;  %v2042_v11 = vpack.c.bf16 %v1603_v10, %v1602_v9 }
 0x723   :  { %v2255_v12 = vpop.eup %2254 }
 0x724   :  { %v1119_v13 = vadd.f32 1.0, %v2255_v12  ;;  %v2257_v0 = vpop.eup %2256  ;;  %v1604_v12 = vld [vmem:[%s3351_s10 + $0x40] sm:$0xff] }
 0x725   :  { %v1120_v14 = vadd.f32 1.0, %v2257_v0  ;;  %v2259_v6 = vpop.eup %2258 }
 0x726   :  { %2262 = vrcp.f32 %v1119_v13  ;;  %v2261_v15 = vpop.eup %2260  ;;  %v1605_v13 = vld [vmem:[%s3351_s10 + $0x48] sm:$0xff] }
 0x727   :  { %2264 = vrcp.f32 %v1120_v14  ;;  %v1121_v19 = vadd.f32 1.0, %v2261_v15  ;;  %v2045_v0 = vpack.c.bf16 %v1605_v13, %v1604_v12  ;;  %v1606_v14 = vld [vmem:[%s3351_s10 + $0x50] sm:$0xff]  ;;  %v1284_v13 = vld [vmem:[%s3353_s3] sm:$0xff] }
 0x729   :  { %2266 = vrcp.f32 %v1121_v19  ;;  %v1610_v19 = vld [vmem:[%s3351_s10 + $0x70] sm:$0xff] }
 0x730   :  { %v2263_v16 = vpop.eup %2262 }
 0x731   :  { %v1130_v17 = vmul.f32 %v2263_v16, %v2259_v6  ;;  %v2265_v18 = vpop.eup %2264  ;;  %v1607_v6 = vld [vmem:[%s3351_s10 + $0x58] sm:$0xff]  ;;  %v1608_v16 = vld [vmem:[%s3351_s10 + $0x60] sm:$0xff] }
 0x732   :  { %v1129_v20 = vmul.f32 %v2265_v18, %v3033_v47  ;;  %v2048_v15 = vpack.c.bf16 %v1607_v6, %v1606_v14 }
 0x733   :  { %v2267_v44 = vpop.eup %2266 }
 0x734   :  { %v1131_v22 = vadd.f32 %v1130_v17, %v1129_v20  ;;  %v1609_v17 = vld [vmem:[%s3351_s10 + $0x68] sm:$0xff]  ;;  %v1611_v20 = vld [vmem:[%s3351_s10 + $0x78] sm:$0xff] }
 0x735   :  { %v2051_v18 = vpack.c.bf16 %v1609_v17, %v1608_v16  ;;  %v2054_v21 = vpack.c.bf16 %v1611_v20, %v1610_v19 }
 0x736   :  { %2268 = vtanh.f32 %v1131_v22  ;;  %v3106_v40 = vsel %vm1140_vm14, %v1131_v22, %v3033_v47  ;;  %v2128_v47 = vld [vmem:[%s3349_s5 + $0x28] ss:$16 sps:$4 sm:$0xff]   ;;  %v1612_v22 = vld [vmem:[%s3352_s11] sm:$0xff] }
 0x740   :  { %v2269_v56 = vpop.eup %2268 }
 0x741   :  { %v1133_v57 = vmul.f32 %v2269_v56, %v2267_v44  ;;  %v1613_v44 = vld [vmem:[%s3352_s11 + $0x8] sm:$0xff] }
 0x742   :  { %v2009_v56 = vpack.c.bf16 %v1613_v44, %v1612_v22 }
 0x743   :  { %v3112_v59 = vsel %vm1140_vm14, %v1133_v57, %v3036_v42  ;;  %v2134_v42 = vld [vmem:[%s3349_s5 + $0x48] ss:$16 sps:$4 sm:$0xff]   ;;  %v2341_v57 = vmov 0.0  }
 0x744   :  { %v1151_v62 = vpack.c.bf16 %v3112_v59, %v3112_v59 }
 0x746   :  { %1185 = vmatmul.mubr.bf16.vlgmr.msra.gmra.mrb[28].mxu0 %v1151_v62  ;;  %1226 = vmatmul.mubr.bf16.vlgmr.msra.gmra.mrb[28].mxu1 %v1151_v62 }
 0x747   :  { %1486 = vmatpush1.bf16.msra.mxu0 %v2110_v58  ;;  %1527 = vmatpush1.bf16.msra.mxu1 %v2122_v60  ;;  %v1614_v58 = vld [vmem:[%s3352_s11 + $0x10] sm:$0xff]  ;;  %v1615_v60 = vld [vmem:[%s3352_s11 + $0x18] sm:$0xff] }
 0x748   :  { %1487 = vmatprep.subr.bf16.mxu0 %v2115_v63  ;;  %1528 = vmatprep.subr.bf16.mxu1 %v2130_v27  ;;  %v2012_v62 = vpack.c.bf16 %v1615_v60, %v1614_v58  ;;  %v1616_v63 = vld [vmem:[%s3352_s11 + $0x20] sm:$0xff]  ;;  %v1617_v27 = vld [vmem:[%s3352_s11 + $0x28] sm:$0xff] }
 0x749   :  { %1517 = vmatprep.mubr.bf16.mxu0 %v2338_v1  ;;  %1558 = vmatprep.mubr.bf16.mxu1 %v2338_v1  ;;  %v2142_v1 = vld [vmem:[%s3349_s5 + $0x6c] ss:$16 sps:$4 sm:$0xff]  }
 0x74b   :  { %1488 = vmatpush1.bf16.msra.mxu0 %v2113_v31  ;;  %1529 = vmatpush1.bf16.msra.mxu1 %v2128_v47  ;;  %v2015_v31 = vpack.c.bf16 %v1617_v27, %v1616_v63  ;;  %v1618_v47 = vld [vmem:[%s3352_s11 + $0x30] sm:$0xff] }
 0x74c   :  { %1489 = vmatprep.subr.bf16.mxu0 %v2118_v36  ;;  %1530 = vmatprep.subr.bf16.mxu1 %v2136_v37  ;;  %v1619_v36 = vld [vmem:[%s3352_s11 + $0x38] sm:$0xff] }
 0x74d   :  { %v2018_v37 = vpack.c.bf16 %v1619_v36, %v1618_v47 }
 0x74f   :  { %1490 = vmatpush1.bf16.msra.mxu0 %v2116_v39  ;;  %1531 = vmatpush1.bf16.msra.mxu1 %v2134_v42  ;;  %v1620_v39 = vld [vmem:[%s3352_s11 + $0x40] sm:$0xff]  ;;  %v1621_v42 = vld [vmem:[%s3352_s11 + $0x48] sm:$0xff] }
 0x750   :  { %1491 = vmatprep.subr.bf16.mxu0 %v2121_v24  ;;  %1532 = vmatprep.subr.bf16.mxu1 %v2142_v1  ;;  %v2021_v24 = vpack.c.bf16 %v1621_v42, %v1620_v39  ;;  %v1622_v1 = vld [vmem:[%s3352_s11 + $0x50] sm:$0xff] }
 0x753   :  { %1492 = vmatpush1.bf16.msra.mxu0 %v2119_v51  ;;  %1533 = vmatpush1.bf16.msra.mxu1 %v2140_v41  ;;  %v1623_v51 = vld [vmem:[%s3352_s11 + $0x58] sm:$0xff] }
 0x754   :  { %1493 = vmatprep.subr.bf16.mxu0 %v2127_v43  ;;  %1534 = vmatprep.subr.bf16.mxu1 %v2148_v45  ;;  %v2024_v41 = vpack.c.bf16 %v1623_v51, %v1622_v1  ;;  %v1624_v43 = vld [vmem:[%s3352_s11 + $0x60] sm:$0xff]  ;;  %v1625_v45 = vld [vmem:[%s3352_s11 + $0x68] sm:$0xff]  ;;  %v1267_v1 = vpop.permute.xlu1 %1266 }
 0x755   :  { %vm1268_vm0 = vcmp.eq.s32.totalorder %v1267_v1, 1 }
 0x757   :  { %1494 = vmatpush1.bf16.msra.mxu0 %v2125_v61  ;;  %1535 = vmatpush1.bf16.msra.mxu1 %v2146_v25  ;;  %v2027_v61 = vpack.c.bf16 %v1625_v45, %v1624_v43  ;;  %v1626_v25 = vld [vmem:[%s3352_s11 + $0x70] sm:$0xff] }
 0x758   :  { %1495 = vmatprep.subr.bf16.mxu0 %v2133_v46  ;;  %1536 = vmatprep.subr.bf16.mxu1 %v2151_v48  ;;  %v1627_v46 = vld [vmem:[%s3352_s11 + $0x78] sm:$0xff] }
 0x759   :  { %v2030_v48 = vpack.c.bf16 %v1627_v46, %v1626_v25  ;;  %v1281_v25 = vpop.permute.xlu0 %1280 }
 0x75b   :  { %1496 = vmatpush1.bf16.msra.mxu0 %v2131_v49  ;;  %1537 = vmatpush1.bf16.msra.mxu1 %v2149_v50  ;;  %v1862_v49 = vld [vmem:[%s3347_s2 + $0x70] sm:$0xff] }
 0x75c   :  { %1497 = vmatprep.subr.bf16.mxu0 %v2139_v52  ;;  %1538 = vmatprep.subr.bf16.mxu1 %v2154_v33  ;;  %v1147_v50 = vunpack.c.l.bf16 %v1862_v49  ;;  %v1148_v52 = vunpack.c.h.bf16 %v1862_v49 }
 0x75f   :  { %1498 = vmatpush1.bf16.msra.mxu0 %v2137_v53  ;;  %1539 = vmatpush1.bf16.msra.mxu1 %v2152_v54 }
 0x760   :  { %1499 = vmatprep.subr.bf16.mxu0 %v2145_v55  ;;  %1540 = vmatprep.subr.bf16.mxu1 %v2157_v2 }
 0x763   :  { %1500 = vmatpush1.bf16.msra.mxu0 %v2143_v3  ;;  %1541 = vmatpush1.bf16.msra.mxu1 %v2155_v5  ;;  %v1863_v3 = vld [vmem:[%s3347_s2 + $0x78] sm:$0xff] }
 0x764   :  { %2032 = vmatprep.subr.bf16.mxu1 %v2339_v26  ;;  %2008 = vmatprep.subr.bf16.mxu0 %v2339_v26  ;;  %v1149_v28 = vunpack.c.l.bf16 %v1863_v3  ;;  %v1150_v30 = vunpack.c.h.bf16 %v1863_v3 }
 0x766   :  { %1518 = vmatmul.mubr.bf16.vlgmr.msra.gmra.mrb[32].mxu0 %v1324_v7  ;;  %1559 = vmatmul.mubr.bf16.vlgmr.msra.gmra.mrb[32].mxu1 %v1324_v7 }
 0x767   :  { %2034 = vmatpush3.bf16.msra.mxu1 %v2033_v29  ;;  %2010 = vmatpush3.bf16.msra.mxu0 %v2009_v56 }
 0x768   :  { %2035 = vmatprep.subr.bf16.mxu1 %v2339_v26  ;;  %2005 = vmatprep.mubr.msk.f32.mxu1 %vm2340_vm15, %v2341_v57 }
 0x769   :  { %2011 = vmatprep.subr.bf16.mxu0 %v2339_v26  ;;  %1970 = vmatprep.mubr.msk.f32.mxu0 %vm2340_vm15, %v2341_v57 }
 0x76b   :  { %2037 = vmatpush3.bf16.msra.mxu1 %v2036_v34  ;;  %2013 = vmatpush3.bf16.msra.mxu0 %v2012_v62 }
 0x76c   :  { %2038 = vmatprep.subr.bf16.mxu1 %v2339_v26  ;;  %2014 = vmatprep.subr.bf16.mxu0 %v2339_v26 }
 0x76f   :  { %2040 = vmatpush3.bf16.msra.mxu1 %v2039_v38  ;;  %2016 = vmatpush3.bf16.msra.mxu0 %v2015_v31 }
 0x770   :  { %2041 = vmatprep.subr.bf16.mxu1 %v2339_v26  ;;  %2017 = vmatprep.subr.bf16.mxu0 %v2339_v26 }
 0x773   :  { %2043 = vmatpush3.bf16.msra.mxu1 %v2042_v11  ;;  %2019 = vmatpush3.bf16.msra.mxu0 %v2018_v37 }
 0x774   :  { %2044 = vmatprep.subr.bf16.mxu1 %v2339_v26  ;;  %2020 = vmatprep.subr.bf16.mxu0 %v2339_v26 }
 0x777   :  { %2046 = vmatpush3.bf16.msra.mxu1 %v2045_v0  ;;  %2022 = vmatpush3.bf16.msra.mxu0 %v2021_v24 }
 0x778   :  { %2047 = vmatprep.subr.bf16.mxu1 %v2339_v26  ;;  %2023 = vmatprep.subr.bf16.mxu0 %v2339_v26 }
 0x77b   :  { %2049 = vmatpush3.bf16.msra.mxu1 %v2048_v15  ;;  %2025 = vmatpush3.bf16.msra.mxu0 %v2024_v41  ;;  %v1320_v15 = vunpack.c.l.bf16 %v1284_v13 }
 0x77c   :  { %2050 = vmatprep.subr.bf16.mxu1 %v2339_v26  ;;  %2026 = vmatprep.subr.bf16.mxu0 %v2339_v26 }
 0x77f   :  { %2052 = vmatpush3.bf16.msra.mxu1 %v2051_v18  ;;  %2028 = vmatpush3.bf16.msra.mxu0 %v2027_v61  ;;  %v1321_v18 = vunpack.c.h.bf16 %v1284_v13 }
 0x780   :  { %2053 = vmatprep.subr.bf16.mxu1 %v2339_v26  ;;  %2029 = vmatprep.subr.bf16.mxu0 %v2339_v26 }
 0x783   :  { %2055 = vmatpush3.bf16.msra.mxu1 %v2054_v21  ;;  %2031 = vmatpush3.bf16.msra.mxu0 %v2030_v48  ;;  %v1285_v21 = vld [vmem:[%s3353_s3 + $0x8] sm:$0xff] }
 0x784   :  { %v1322_v47 = vunpack.c.l.bf16 %v1285_v21  ;;  %v1323_v39 = vunpack.c.h.bf16 %v1285_v21 }
 0x819   :  { %v1186_v33 = vpop.f32.mrb[28].mxu0  ;;  %v1227_v53 = vpop.f32.mrb[28].mxu1 }
 0x81a   :  { %v1234_v54 = vadd.f32 %v1186_v33, %v1147_v50  ;;  %v1188_v55 = vpop.f32.mrb[29].mxu0  ;;  %v1229_v2 = vpop.f32.mrb[29].mxu1  ;;  %v1236_v34 = vadd.f32 %v1227_v53, %v1149_v28  ;;  %v1287_v53 = vld [vmem:[%s3354_s9] sm:$0xff] }
 0x81b   :  { %v1235_v4 = vadd.f32 %v1188_v55, %v1148_v52  ;;  %v1190_v5 = vpop.f32.mrb[30].mxu0  ;;  %v1231_v7 = vpop.f32.mrb[30].mxu1  ;;  %v1237_v32 = vadd.f32 %v1229_v2, %v1150_v30  ;;  %v1903_v30 = vld [vmem:[%s3355_s12] ss:$0 sm:$0xff] }
 0x81c   :  { %v1864_v8 = vmul.f32 -1.442695, %v1234_v54  ;;  %v1191_v23 = vpop.f32.mrb[31].mxu0  ;;  %v1232_v29 = vpop.f32.mrb[31].mxu1  ;;  %v1866_v35 = vmul.f32 -1.442695, %v1236_v34 }
 0x81d   :  { %v1865_v26 = vmul.f32 -1.442695, %v1235_v4 }
 0x81e   :  { %2270 = vpow2.f32 %v1864_v8 }
 0x81f   :  { %2272 = vpow2.f32 %v1865_v26 }
 0x820   :  { %2274 = vtanh.f32 %v1237_v32 }
 0x821   :  { %2276 = vpow2.f32 %v1866_v35 }
 0x828   :  { %v2271_v38 = vpop.eup %2270 }
 0x829   :  { %v1247_v9 = vadd.f32 1.0, %v2271_v38  ;;  %v2273_v10 = vpop.eup %2272 }
 0x82a   :  { %v1248_v11 = vadd.f32 1.0, %v2273_v10  ;;  %v2275_v12 = vpop.eup %2274 }
 0x82b   :  { %2278 = vrcp.f32 %v1247_v9  ;;  %v2277_v0 = vpop.eup %2276 }
 0x82c   :  { %2280 = vrcp.f32 %v1248_v11  ;;  %v1249_v17 = vadd.f32 1.0, %v2277_v0 }
 0x82e   :  { %2282 = vrcp.f32 %v1249_v17 }
 0x835   :  { %v2279_v14 = vpop.eup %2278 }
 0x836   :  { %v1258_v6 = vmul.f32 %v2279_v14, %v2275_v12  ;;  %v2281_v16 = vpop.eup %2280 }
 0x837   :  { %v1257_v19 = vmul.f32 %v2281_v16, %v3106_v40 }
 0x838   :  { %v2283_v24 = vpop.eup %2282 }
 0x839   :  { %v1519_v20 = vpop.f32.mrb[32].mxu0  ;;  %v1560_v22 = vpop.f32.mrb[32].mxu1  ;;  %v1259_v44 = vadd.f32 %v1258_v6, %v1257_v19 }
 0x83a   :  { %v1567_v56 = vadd.f32 %v1519_v20, %v1320_v15  ;;  %v1521_v57 = vpop.f32.mrb[33].mxu0  ;;  %v1562_v58 = vpop.f32.mrb[33].mxu1  ;;  %v1569_v37 = vadd.f32 %v1560_v22, %v1322_v47 }
 0x83b   :  { %v1568_v60 = vadd.f32 %v1521_v57, %v1321_v18  ;;  %v1523_v62 = vpop.f32.mrb[34].mxu0  ;;  %v1564_v63 = vpop.f32.mrb[34].mxu1  ;;  %2284 = vtanh.f32 %v1259_v44  ;;  %v1570_v51 = vadd.f32 %v1562_v58, %v1323_v39 }
 0x83c   :  { %v1900_v27 = vmul.f32 -1.442695, %v1567_v56  ;;  %v1524_v31 = vpop.f32.mrb[35].mxu0  ;;  %v1565_v36 = vpop.f32.mrb[35].mxu1  ;;  %v1902_v42 = vmul.f32 -1.442695, %v1569_v37 }
 0x83d   :  { %v1901_v40 = vmul.f32 -1.442695, %v1568_v60 }
 0x83e   :  { %2286 = vpow2.f32 %v1900_v27 }
 0x83f   :  { %2288 = vpow2.f32 %v1901_v40 }
 0x840   :  { %2290 = vpow2.f32 %v1902_v42 }
 0x841   :  { %2292 = vtanh.f32 %v1570_v51 }
 0x845   :  { %v2285_v41 = vpop.eup %2284 }
 0x846   :  { %v1261_v43 = vmul.f32 %v2285_v41, %v2283_v24 }
 0x848   :  { %v2287_v45 = vpop.eup %2286  ;;  %v1269_v48 = vsel %vm1268_vm0, %v1261_v43, %v3112_v59 }
 0x849   :  { %v2289_v61 = vpop.eup %2288  ;;  %v1580_v46 = vadd.f32 1.0, %v2287_v45  ;;  %v1283_v50 = vmul.f32 %v1281_v25, %v1269_v48 }
 0x84a   :  { %v1581_v49 = vadd.f32 1.0, %v2289_v61  ;;  %v2291_v52 = vpop.eup %2290 }
 0x84b   :  { %2294 = vrcp.f32 %v1580_v46  ;;  %2006 = vmatmul.mubr.f32.vlgmr.msra.gmra.mrb[36].mxu1 %v1283_v50  ;;  %v2293_v33 = vpop.eup %2292  ;;  %v1582_v55 = vadd.f32 1.0, %v2291_v52 }
 0x84c   :  { %2296 = vrcp.f32 %v1581_v49 }
 0x84d   :  { %2298 = vrcp.f32 %v1582_v55 }
 0x855   :  { %v2295_v54 = vpop.eup %2294 }
 0x856   :  { %v2297_v2 = vpop.eup %2296  ;;  %v1591_v3 = vmul.f32 %v2295_v54, %v2293_v33 }
 0x857   :  { %v1590_v4 = vmul.f32 %v2297_v2, %v1287_v53  ;;  %v2299_v59 = vpop.eup %2298 }
 0x859   :  { %v1592_v5 = vadd.f32 %v1591_v3, %v1590_v4 }
 0x85b   :  { %2300 = vtanh.f32 %v1592_v5 }
 0x865   :  { %v2301_v7 = vpop.eup %2300 }
 0x866   :  { %v1594_v8 = vmul.f32 %v2301_v7, %v2299_v59 }
 0x868   :  { %v1595_v23 = vmul.f32 %v1594_v8, %v1281_v25 }
 0x86a   :  { %1971 = vmatmul.mubr.f32.vlgmr.msra.gmra.mrb[36].mxu0 %v1595_v23 }
 0x91e   :  { %v1764_v29 = vpop.f32.mrb[36].mxu1 }
 0x91f   :  { %v2007_v26 = vpop.f32.mrb[37].mxu1 }
 0x93d   :  { %v1694_v28 = vpop.f32.mrb[36].mxu0 }
 0x93e   :  { %v1765_v34 = vadd.f32 %v1764_v29, %v1694_v28  ;;  %v1972_v32 = vpop.f32.mrb[37].mxu0 }
 0x940   :  { %v1775_v35 = vadd.f32 %v1903_v30, %v1765_v34 }
 0x942   :  { %1776 = vmax.xlane.f32.xlu1 %v1775_v35 }
 0x9cf   :  { %v1777_v38 = vpop.xlane.xlu1 %1776 }
 0x9d0   :  { %v1778_v9 = vsub.f32 %v1775_v35, %v1777_v38 }
 0x9d2   :  { %v1779_v10 = vmul.f32 1.442695, %v1778_v9 }
 0x9d4   :  { %2302 = vpow2.f32 %v1779_v10 }
 0x9de   :  { %v2303_v11 = vpop.eup %2302 }
 0x9df   :  { %1781 = vadd.xlane.f32.xlu0 %v2303_v11 }
 0xa6c   :  { %v1782_v12 = vpop.xlane.xlu0 %1781 }
 0xa6d   :  { %2304 = vrcp.f32 %v1782_v12 }
 0xa77   :  { %v2305_v13 = vpop.eup %2304 }
 0xa78   :  { %v1784_v0 = vmul.f32 %v2305_v13, %v2303_v11 }
 0xa7a   :  { %1785 = vst [vmem:[%s3356_s13] sm:$0xff] %v1784_v0 }

</bundles_post_ra>
